<compile_context>
chip_gen: v6e
topology: v6e:2x2x1
jax: 0.10.0
libtpu: 0.0.40
codegen_flags: <defaults>
</compile_context>

<pallas_src>
import functools

import jax
import jax.numpy as jnp
from jax.experimental import pallas as pl
from jax.experimental.pallas import tpu as pltpu

LANE = 128


def _round_up(x, m):
    return ((x + m - 1) // m) * m


def _vmem_limit_bytes():
    try:
        cap = int(pltpu.get_tpu_info().vmem_capacity_bytes)
    except Exception:
        cap = 64 * 1024 * 1024  # conservative (v7x per-TC VMEM)
    return (cap * 7) // 8


def _gcn_fused_kernel(adj_ref, feat_ref, w_ref, bias_ref, gamma_ref, beta_ref,
                      out_ref, h_scr, *, n_layers, n_real, eps):
    """Fused multi-layer GCN forward.

    adj_ref   : (Npad, Npad)       bf16  normalized adjacency, zero-padded
    feat_ref  : (Npad, Fpad)       bf16  input features, zero-padded
    w_ref     : (L, Fpad, Fpad)    bf16  stacked, zero-padded layer weights
    bias_ref  : (1, Fpad)          f32   last-layer bias (padding zeroed)
    gamma_ref : (max(L-1,1),1,Fpad) f32  BN scale per hidden layer (pad = 1)
    beta_ref  : (max(L-1,1),1,Fpad) f32  BN shift per hidden layer (pad = 0)
    out_ref   : (Npad, Fpad)       f32   padded output
    h_scr     : (Npad, Fpad)       bf16  VMEM-resident activations
    """
    npad = h_scr.shape[0]
    inv_n = 1.0 / float(n_real)

    # Row-validity mask: padded rows of agg are exactly zero, so they do not
    # perturb the column sums (mean), but they must be excluded from the
    # centered second moment.
    row_ids = jax.lax.broadcasted_iota(jnp.int32, (npad, 1), 0)
    row_mask = (row_ids < n_real).astype(jnp.float32)

    h_scr[...] = feat_ref[...]                   # H_0 (already bf16)

    for l in range(n_layers):                    # static unroll (small L)
        last = l == n_layers - 1
        w = w_ref[l]                             # (Fpad, Fpad) bf16, static idx

        # H @ W  -> (Npad, Fpad)   (MXU, bf16 operands, f32 accumulate)
        hw = jnp.dot(h_scr[...], w, preferred_element_type=jnp.float32)
        # A_hat @ (H W): adjacency indexed from its VMEM ref every layer
        # (not hoisted into vregs across the loop).
        agg = jnp.dot(adj_ref[...], hw.astype(jnp.bfloat16),
                      preferred_element_type=jnp.float32)

        if last:
            out_ref[...] = agg + bias_ref[...]
        else:
            # BatchNorm1d (training-mode batch stats, biased variance) + ReLU.
            # Two-pass variance for numerical stability; divisors use real N.
            mean = jnp.sum(agg, axis=0, keepdims=True) * inv_n
            centered = (agg - mean) * row_mask
            var = jnp.sum(centered * centered, axis=0, keepdims=True) * inv_n
            hn = (agg - mean) * jax.lax.rsqrt(var + eps)
            hn = hn * gamma_ref[l] + beta_ref[l]
            # Padded rows pick up (0-mean)/sigma*gamma+beta garbage here; that
            # is harmless because the padded *columns* of A_hat are zero, so
            # those rows never contaminate real rows in the next aggregation,
            # and padded output rows are sliced off in the wrapper.
            h_scr[...] = jnp.maximum(hn, 0.0).astype(jnp.bfloat16)


def gcn_forward(adj_norm, feat, params, eps=1e-5):
    """Full fused GCN forward.

    adj_norm: (N, N) f32 symmetrically normalized adjacency.
    feat:     (N, in_dim) f32 node features.
    """
    n, in_dim = feat.shape
    n_layers = len(params["weights"])
    hid_dim = params["weights"][0].shape[1] if n_layers > 1 else in_dim
    out_dim = params["weights"][-1].shape[1]

    max_dim = max(in_dim, hid_dim, out_dim)
    # <=128: pad to 128. >128: pad to a multiple of 256 (full 256-wide MXU).
    fpad = LANE if max_dim <= LANE else _round_up(max_dim, 2 * LANE)
    npad = _round_up(n, LANE)

    # --- pack / pad parameters (done once in the wrapper; trivial cost) ------
    w_stack = jnp.zeros((n_layers, fpad, fpad), jnp.float32)
    for i, w in enumerate(params["weights"]):
        w_stack = w_stack.at[i, : w.shape[0], : w.shape[1]].set(w)
    w_stack = w_stack.astype(jnp.bfloat16)

    bias = jnp.zeros((1, fpad), jnp.float32)
    bias = bias.at[:, :out_dim].set(params["bias"])

    n_bn = max(n_layers - 1, 1)
    gamma = jnp.ones((n_bn, 1, fpad), jnp.float32)   # padding gamma = 1
    beta = jnp.zeros((n_bn, 1, fpad), jnp.float32)   # padding beta  = 0
    for i in range(n_layers - 1):
        g = params["gammas"][i]
        b = params["betas"][i]
        gamma = gamma.at[i, :, : g.shape[-1]].set(g)
        beta = beta.at[i, :, : b.shape[-1]].set(b)

    feat_pad = jnp.zeros((npad, fpad), jnp.float32).at[:n, :in_dim].set(feat)
    feat_pad = feat_pad.astype(jnp.bfloat16)

    adj_pad = jnp.zeros((npad, npad), jnp.float32).at[:n, :n].set(adj_norm)
    adj_bf = adj_pad.astype(jnp.bfloat16)

    kernel = functools.partial(_gcn_fused_kernel, n_layers=n_layers,
                               n_real=n, eps=eps)

    def _make_spec(shape, single_buffer):
        nd = len(shape)
        idx_map = lambda i, _nd=nd: (0,) * _nd
        if single_buffer:
            # grid=(1,): nothing to pipeline, so single-buffer the big operand.
            return pl.BlockSpec(shape, idx_map, pipeline_mode=pl.Buffered(1))
        return pl.BlockSpec(shape, idx_map)

    def _call(use_buffered):
        in_specs = [
            _make_spec(adj_bf.shape, use_buffered),
            _make_spec(feat_pad.shape, False),
            _make_spec(w_stack.shape, False),
            _make_spec(bias.shape, False),
            _make_spec(gamma.shape, False),
            _make_spec(beta.shape, False),
        ]
        return pl.pallas_call(
            kernel,
            out_shape=jax.ShapeDtypeStruct((npad, fpad), jnp.float32),
            grid=(1,),
            in_specs=in_specs,
            out_specs=_make_spec((npad, fpad), False),
            scratch_shapes=[pltpu.VMEM((npad, fpad), jnp.bfloat16)],
            compiler_params=pltpu.CompilerParams(
                dimension_semantics=("arbitrary",),
                vmem_limit_bytes=_vmem_limit_bytes()),
        )(adj_bf, feat_pad, w_stack, bias, gamma, beta)

    try:
        out_pad = _call(True)
    except Exception:
        # Fallback if this JAX build rejects pipeline_mode=pl.Buffered(1).
        out_pad = _call(False)

    return out_pad[:n, :out_dim]


def build_params(key, in_dim, hid_dim, out_dim, n_layers):
    weights, gammas, betas = [], [], []
    bias = None
    for i in range(n_layers):
        in_h = hid_dim if i > 0 else in_dim
        out_h = hid_dim if i < n_layers - 1 else out_dim
        key, kw, kb, kg = jax.random.split(key, 4)
        weights.append(0.1 * jax.random.normal(kw, (in_h, out_h), jnp.float32))
        if i == n_layers - 1:
            bias = 0.05 * jax.random.normal(kb, (1, out_h), jnp.float32)
        else:
            gammas.append(
                1.0 + 0.1 * jax.random.normal(kg, (1, out_h), jnp.float32))
            betas.append(0.01 * jnp.ones((1, out_h), jnp.float32))
    return {"weights": weights, "bias": bias, "gammas": gammas, "betas": betas}


def build_graph(key, n):
    """Random symmetric graph with self-loops; return D^{-1/2} A D^{-1/2}."""
    a = (jax.random.uniform(key, (n, n)) < 0.1).astype(jnp.float32)
    a = jnp.maximum(a, a.T)
    a = jnp.maximum(a, jnp.eye(n, dtype=jnp.float32))  # self-loops -> deg >= 1
    deg = jnp.sum(a, axis=1)
    d_inv_sqrt = 1.0 / jnp.sqrt(deg)
    return a * d_inv_sqrt[:, None] * d_inv_sqrt[None, :]


def reference_forward(adj_norm, feat, params, eps=1e-5):
    """Pure-JAX reference matching the kernel math (bf16 matmul operands,
    f32 accumulation, two-pass biased variance)."""
    adj_bf = adj_norm.astype(jnp.bfloat16)
    h = feat.astype(jnp.bfloat16)
    n_layers = len(params["weights"])
    for i in range(n_layers):
        last = i == n_layers - 1
        w_bf = params["weights"][i].astype(jnp.bfloat16)
        hw = jnp.dot(h, w_bf, preferred_element_type=jnp.float32)
        agg = jnp.dot(adj_bf, hw.astype(jnp.bfloat16),
                      preferred_element_type=jnp.float32)
        if last:
            return agg + params["bias"]
        mean = jnp.mean(agg, axis=0, keepdims=True)
        var = jnp.mean((agg - mean) ** 2, axis=0, keepdims=True)
        hn = (agg - mean) * jax.lax.rsqrt(var + eps)
        hn = hn * params["gammas"][i] + params["betas"][i]
        h = jnp.maximum(hn, 0.0).astype(jnp.bfloat16)
    return h


if __name__ == "__main__":
    info_dict = {"n_layers": 3, "in_dim": 16, "hid_dim": 32, "out_dim": 8,
                 "dropout": 0.0}
    N = 64  # number of graph nodes

    key = jax.random.PRNGKey(0)
    k_feat, k_graph, k_params = jax.random.split(key, 3)

    feat = jax.random.normal(k_feat, (N, info_dict["in_dim"]), jnp.float32)
    adj_norm = build_graph(k_graph, N)
    params = build_params(k_params, info_dict["in_dim"], info_dict["hid_dim"],
                          info_dict["out_dim"], info_dict["n_layers"])

    out = gcn_forward(adj_norm, feat, params)
    out = jax.block_until_ready(out)

    ref = reference_forward(adj_norm, feat, params)
    assert out.shape == (N, info_dict["out_dim"])
    assert jnp.allclose(out, ref, atol=2e-2, rtol=2e-2), "mismatch vs reference"

    print("KERNEL_OK")
</pallas_src>

<mosaic_0001>
module attributes {stable_mosaic.version = 11 : i64} {
  func.func @_gcn_fused_kernel(%arg0: i32, %arg1: memref<128x128xbf16, #tpu.memory_space<vmem>>, %arg2: memref<128x128xbf16, #tpu.memory_space<vmem>>, %arg3: memref<3x128x128xbf16, #tpu.memory_space<vmem>>, %arg4: memref<1x128xf32, #tpu.memory_space<vmem>>, %arg5: memref<2x1x128xf32, #tpu.memory_space<vmem>>, %arg6: memref<2x1x128xf32, #tpu.memory_space<vmem>>, %arg7: memref<128x128xf32, #tpu.memory_space<vmem>>, %arg8: memref<128x128xbf16, #tpu.memory_space<vmem>>) attributes {dimension_semantics = [#tpu.dimension_semantics<arbitrary>], iteration_bounds = array<i64: 1>, scalar_prefetch = 0 : i64, scratch_operands = 1 : i64, tpu.core_type = #tpu.core_type<tc>, window_params = [{pipeline_mode = #tpu.pipeline_mode<synchronous>, transform_indices = @transform_0, window_bounds = array<i64: 128, 128>}, {pipeline_mode = #tpu.pipeline_mode<synchronous>, transform_indices = @transform_1, window_bounds = array<i64: 128, 128>}, {pipeline_mode = #tpu.pipeline_mode<synchronous>, transform_indices = @transform_2, window_bounds = array<i64: 3, 128, 128>}, {pipeline_mode = #tpu.pipeline_mode<synchronous>, transform_indices = @transform_3, window_bounds = array<i64: 1, 128>}, {pipeline_mode = #tpu.pipeline_mode<synchronous>, transform_indices = @transform_4, window_bounds = array<i64: 2, 1, 128>}, {pipeline_mode = #tpu.pipeline_mode<synchronous>, transform_indices = @transform_5, window_bounds = array<i64: 2, 1, 128>}, {pipeline_mode = #tpu.pipeline_mode<synchronous>, transform_indices = @transform_6, window_bounds = array<i64: 128, 128>}]} {
    %0 = tpu.iota {dimensions = array<i32: 0>} : vector<128x1xi32>
    %c64_i32 = arith.constant 64 : i32
    %1 = vector.broadcast %c64_i32 : i32 to vector<128x1xi32>
    %2 = arith.cmpi slt, %0, %1 : vector<128x1xi32>
    %3 = arith.extui %2 : vector<128x1xi1> to vector<128x1xi32>
    %4 = arith.sitofp %3 : vector<128x1xi32> to vector<128x1xf32>
    %c0 = arith.constant 0 : index
    %c0_0 = arith.constant 0 : index
    %5 = vector.load %arg2[%c0, %c0_0] : memref<128x128xbf16, #tpu.memory_space<vmem>>, vector<128x128xbf16>
    %c0_1 = arith.constant 0 : index
    %c0_2 = arith.constant 0 : index
    %6 = vector.load %arg8[%c0_1, %c0_2] : memref<128x128xbf16, #tpu.memory_space<vmem>>, vector<128x128xbf16>
    tpu.vector_store %arg8[%c0_1, %c0_2], %5 {strides = array<i32>} : memref<128x128xbf16, #tpu.memory_space<vmem>>, vector<128x128xbf16>,
    %c0_3 = arith.constant 0 : index
    %c0_4 = arith.constant 0 : index
    %c0_5 = arith.constant 0 : index
    %7 = vector.load %arg3[%c0_3, %c0_4, %c0_5] : memref<3x128x128xbf16, #tpu.memory_space<vmem>>, vector<1x128x128xbf16>
    %8 = vector.shape_cast %7 : vector<1x128x128xbf16> to vector<128x128xbf16>
    %c0_6 = arith.constant 0 : index
    %c0_7 = arith.constant 0 : index
    %9 = vector.load %arg8[%c0_6, %c0_7] : memref<128x128xbf16, #tpu.memory_space<vmem>>, vector<128x128xbf16>
    %cst = arith.constant dense<0.000000e+00> : vector<128x128xf32>
    %10 = tpu.matmul %9, %8, %cst {dimension_numbers = #tpu.dot_dimension_numbers<[1], [0], [0], [1], [0, 0, 1, 1], [], []>} : vector<128x128xbf16>, vector<128x128xbf16>, vector<128x128xf32> -> vector<128x128xf32>
    %c0_8 = arith.constant 0 : index
    %c0_9 = arith.constant 0 : index
    %11 = vector.load %arg1[%c0_8, %c0_9] : memref<128x128xbf16, #tpu.memory_space<vmem>>, vector<128x128xbf16>
    %12 = arith.truncf %10 : vector<128x128xf32> to vector<128x128xbf16>
    %cst_10 = arith.constant dense<0.000000e+00> : vector<128x128xf32>
    %13 = tpu.matmul %11, %12, %cst_10 {dimension_numbers = #tpu.dot_dimension_numbers<[1], [0], [0], [1], [0, 0, 1, 1], [], []>} : vector<128x128xbf16>, vector<128x128xbf16>, vector<128x128xf32> -> vector<128x128xf32>
    %cst_11 = arith.constant dense<0.000000e+00> : vector<128xf32>
    %14 = vector.multi_reduction <add>, %13, %cst_11 [0] : vector<128x128xf32> to vector<128xf32>
    %15 = vector.shape_cast %14 : vector<128xf32> to vector<1x128xf32>
    %cst_12 = arith.constant 1.562500e-02 : f32
    %16 = vector.broadcast %cst_12 : f32 to vector<1x128xf32>
    %17 = arith.mulf %15, %16 : vector<1x128xf32>
    %18 = vector.broadcast %17 : vector<1x128xf32> to vector<128x128xf32>
    %19 = arith.subf %13, %18 : vector<128x128xf32>
    %20 = vector.broadcast %4 : vector<128x1xf32> to vector<128x128xf32>
    %21 = arith.mulf %19, %20 : vector<128x128xf32>
    %22 = arith.mulf %21, %21 : vector<128x128xf32>
    %cst_13 = arith.constant dense<0.000000e+00> : vector<128xf32>
    %23 = vector.multi_reduction <add>, %22, %cst_13 [0] : vector<128x128xf32> to vector<128xf32>
    %24 = vector.shape_cast %23 : vector<128xf32> to vector<1x128xf32>
    %cst_14 = arith.constant 1.562500e-02 : f32
    %25 = vector.broadcast %cst_14 : f32 to vector<1x128xf32>
    %26 = arith.mulf %24, %25 : vector<1x128xf32>
    %27 = vector.broadcast %17 : vector<1x128xf32> to vector<128x128xf32>
    %28 = arith.subf %13, %27 : vector<128x128xf32>
    %cst_15 = arith.constant 9.99999974E-6 : f32
    %29 = vector.broadcast %cst_15 : f32 to vector<1x128xf32>
    %30 = arith.addf %26, %29 : vector<1x128xf32>
    %31 = math.rsqrt %30 : vector<1x128xf32>
    %32 = vector.broadcast %31 : vector<1x128xf32> to vector<128x128xf32>
    %33 = arith.mulf %28, %32 : vector<128x128xf32>
    %c0_16 = arith.constant 0 : index
    %c0_17 = arith.constant 0 : index
    %c0_18 = arith.constant 0 : index
    %34 = vector.load %arg5[%c0_16, %c0_17, %c0_18] : memref<2x1x128xf32, #tpu.memory_space<vmem>>, vector<1x1x128xf32>
    %35 = vector.shape_cast %34 : vector<1x1x128xf32> to vector<1x128xf32>
    %36 = vector.broadcast %35 : vector<1x128xf32> to vector<128x128xf32>
    %37 = arith.mulf %33, %36 : vector<128x128xf32>
    %c0_19 = arith.constant 0 : index
    %c0_20 = arith.constant 0 : index
    %c0_21 = arith.constant 0 : index
    %38 = vector.load %arg6[%c0_19, %c0_20, %c0_21] : memref<2x1x128xf32, #tpu.memory_space<vmem>>, vector<1x1x128xf32>
    %39 = vector.shape_cast %38 : vector<1x1x128xf32> to vector<1x128xf32>
    %40 = vector.broadcast %39 : vector<1x128xf32> to vector<128x128xf32>
    %41 = arith.addf %37, %40 : vector<128x128xf32>
    %cst_22 = arith.constant 0.000000e+00 : f32
    %42 = vector.broadcast %cst_22 : f32 to vector<128x128xf32>
    %43 = arith.maximumf %41, %42 : vector<128x128xf32>
    %44 = arith.truncf %43 : vector<128x128xf32> to vector<128x128xbf16>
    %c0_23 = arith.constant 0 : index
    %c0_24 = arith.constant 0 : index
    %45 = vector.load %arg8[%c0_23, %c0_24] : memref<128x128xbf16, #tpu.memory_space<vmem>>, vector<128x128xbf16>
    tpu.vector_store %arg8[%c0_23, %c0_24], %44 {strides = array<i32>} : memref<128x128xbf16, #tpu.memory_space<vmem>>, vector<128x128xbf16>,
    %c1 = arith.constant 1 : index
    %c0_25 = arith.constant 0 : index
    %c0_26 = arith.constant 0 : index
    %46 = vector.load %arg3[%c1, %c0_25, %c0_26] : memref<3x128x128xbf16, #tpu.memory_space<vmem>>, vector<1x128x128xbf16>
    %47 = vector.shape_cast %46 : vector<1x128x128xbf16> to vector<128x128xbf16>
    %c0_27 = arith.constant 0 : index
    %c0_28 = arith.constant 0 : index
    %48 = vector.load %arg8[%c0_27, %c0_28] : memref<128x128xbf16, #tpu.memory_space<vmem>>, vector<128x128xbf16>
    %cst_29 = arith.constant dense<0.000000e+00> : vector<128x128xf32>
    %49 = tpu.matmul %48, %47, %cst_29 {dimension_numbers = #tpu.dot_dimension_numbers<[1], [0], [0], [1], [0, 0, 1, 1], [], []>} : vector<128x128xbf16>, vector<128x128xbf16>, vector<128x128xf32> -> vector<128x128xf32>
    %c0_30 = arith.constant 0 : index
    %c0_31 = arith.constant 0 : index
    %50 = vector.load %arg1[%c0_30, %c0_31] : memref<128x128xbf16, #tpu.memory_space<vmem>>, vector<128x128xbf16>
    %51 = arith.truncf %49 : vector<128x128xf32> to vector<128x128xbf16>
    %cst_32 = arith.constant dense<0.000000e+00> : vector<128x128xf32>
    %52 = tpu.matmul %50, %51, %cst_32 {dimension_numbers = #tpu.dot_dimension_numbers<[1], [0], [0], [1], [0, 0, 1, 1], [], []>} : vector<128x128xbf16>, vector<128x128xbf16>, vector<128x128xf32> -> vector<128x128xf32>
    %cst_33 = arith.constant dense<0.000000e+00> : vector<128xf32>
    %53 = vector.multi_reduction <add>, %52, %cst_33 [0] : vector<128x128xf32> to vector<128xf32>
    %54 = vector.shape_cast %53 : vector<128xf32> to vector<1x128xf32>
    %cst_34 = arith.constant 1.562500e-02 : f32
    %55 = vector.broadcast %cst_34 : f32 to vector<1x128xf32>
    %56 = arith.mulf %54, %55 : vector<1x128xf32>
    %57 = vector.broadcast %56 : vector<1x128xf32> to vector<128x128xf32>
    %58 = arith.subf %52, %57 : vector<128x128xf32>
    %59 = vector.broadcast %4 : vector<128x1xf32> to vector<128x128xf32>
    %60 = arith.mulf %58, %59 : vector<128x128xf32>
    %61 = arith.mulf %60, %60 : vector<128x128xf32>
    %cst_35 = arith.constant dense<0.000000e+00> : vector<128xf32>
    %62 = vector.multi_reduction <add>, %61, %cst_35 [0] : vector<128x128xf32> to vector<128xf32>
    %63 = vector.shape_cast %62 : vector<128xf32> to vector<1x128xf32>
    %cst_36 = arith.constant 1.562500e-02 : f32
    %64 = vector.broadcast %cst_36 : f32 to vector<1x128xf32>
    %65 = arith.mulf %63, %64 : vector<1x128xf32>
    %66 = vector.broadcast %56 : vector<1x128xf32> to vector<128x128xf32>
    %67 = arith.subf %52, %66 : vector<128x128xf32>
    %cst_37 = arith.constant 9.99999974E-6 : f32
    %68 = vector.broadcast %cst_37 : f32 to vector<1x128xf32>
    %69 = arith.addf %65, %68 : vector<1x128xf32>
    %70 = math.rsqrt %69 : vector<1x128xf32>
    %71 = vector.broadcast %70 : vector<1x128xf32> to vector<128x128xf32>
    %72 = arith.mulf %67, %71 : vector<128x128xf32>
    %c1_38 = arith.constant 1 : index
    %c0_39 = arith.constant 0 : index
    %c0_40 = arith.constant 0 : index
    %73 = vector.load %arg5[%c1_38, %c0_39, %c0_40] : memref<2x1x128xf32, #tpu.memory_space<vmem>>, vector<1x1x128xf32>
    %74 = vector.shape_cast %73 : vector<1x1x128xf32> to vector<1x128xf32>
    %75 = vector.broadcast %74 : vector<1x128xf32> to vector<128x128xf32>
    %76 = arith.mulf %72, %75 : vector<128x128xf32>
    %c1_41 = arith.constant 1 : index
    %c0_42 = arith.constant 0 : index
    %c0_43 = arith.constant 0 : index
    %77 = vector.load %arg6[%c1_41, %c0_42, %c0_43] : memref<2x1x128xf32, #tpu.memory_space<vmem>>, vector<1x1x128xf32>
    %78 = vector.shape_cast %77 : vector<1x1x128xf32> to vector<1x128xf32>
    %79 = vector.broadcast %78 : vector<1x128xf32> to vector<128x128xf32>
    %80 = arith.addf %76, %79 : vector<128x128xf32>
    %cst_44 = arith.constant 0.000000e+00 : f32
    %81 = vector.broadcast %cst_44 : f32 to vector<128x128xf32>
    %82 = arith.maximumf %80, %81 : vector<128x128xf32>
    %83 = arith.truncf %82 : vector<128x128xf32> to vector<128x128xbf16>
    %c0_45 = arith.constant 0 : index
    %c0_46 = arith.constant 0 : index
    %84 = vector.load %arg8[%c0_45, %c0_46] : memref<128x128xbf16, #tpu.memory_space<vmem>>, vector<128x128xbf16>
    tpu.vector_store %arg8[%c0_45, %c0_46], %83 {strides = array<i32>} : memref<128x128xbf16, #tpu.memory_space<vmem>>, vector<128x128xbf16>,
    %c2 = arith.constant 2 : index
    %c0_47 = arith.constant 0 : index
    %c0_48 = arith.constant 0 : index
    %85 = vector.load %arg3[%c2, %c0_47, %c0_48] : memref<3x128x128xbf16, #tpu.memory_space<vmem>>, vector<1x128x128xbf16>
    %86 = vector.shape_cast %85 : vector<1x128x128xbf16> to vector<128x128xbf16>
    %c0_49 = arith.constant 0 : index
    %c0_50 = arith.constant 0 : index
    %87 = vector.load %arg8[%c0_49, %c0_50] : memref<128x128xbf16, #tpu.memory_space<vmem>>, vector<128x128xbf16>
    %cst_51 = arith.constant dense<0.000000e+00> : vector<128x128xf32>
    %88 = tpu.matmul %87, %86, %cst_51 {dimension_numbers = #tpu.dot_dimension_numbers<[1], [0], [0], [1], [0, 0, 1, 1], [], []>} : vector<128x128xbf16>, vector<128x128xbf16>, vector<128x128xf32> -> vector<128x128xf32>
    %c0_52 = arith.constant 0 : index
    %c0_53 = arith.constant 0 : index
    %89 = vector.load %arg1[%c0_52, %c0_53] : memref<128x128xbf16, #tpu.memory_space<vmem>>, vector<128x128xbf16>
    %90 = arith.truncf %88 : vector<128x128xf32> to vector<128x128xbf16>
    %cst_54 = arith.constant dense<0.000000e+00> : vector<128x128xf32>
    %91 = tpu.matmul %89, %90, %cst_54 {dimension_numbers = #tpu.dot_dimension_numbers<[1], [0], [0], [1], [0, 0, 1, 1], [], []>} : vector<128x128xbf16>, vector<128x128xbf16>, vector<128x128xf32> -> vector<128x128xf32>
    %c0_55 = arith.constant 0 : index
    %c0_56 = arith.constant 0 : index
    %92 = vector.load %arg4[%c0_55, %c0_56] : memref<1x128xf32, #tpu.memory_space<vmem>>, vector<1x128xf32>
    %93 = vector.broadcast %92 : vector<1x128xf32> to vector<128x128xf32>
    %94 = arith.addf %91, %93 : vector<128x128xf32>
    %c0_57 = arith.constant 0 : index
    %c0_58 = arith.constant 0 : index
    %95 = vector.load %arg7[%c0_57, %c0_58] : memref<128x128xf32, #tpu.memory_space<vmem>>, vector<128x128xf32>
    tpu.vector_store %arg7[%c0_57, %c0_58], %94 {strides = array<i32>} : memref<128x128xf32, #tpu.memory_space<vmem>>, vector<128x128xf32>,
    return
  }
  func.func @transform_0(%arg0: i32) -> (i32, i32) {
    %c0_i32 = arith.constant 0 : i32
    %c0_i32_0 = arith.constant 0 : i32
    %c0_i32_1 = arith.constant 0 : i32
    return %c0_i32, %c0_i32_0 : i32, i32
  }
  func.func @transform_1(%arg0: i32) -> (i32, i32) {
    %c0_i32 = arith.constant 0 : i32
    %c0_i32_0 = arith.constant 0 : i32
    %c0_i32_1 = arith.constant 0 : i32
    return %c0_i32, %c0_i32_0 : i32, i32
  }
  func.func @transform_2(%arg0: i32) -> (i32, i32, i32) {
    %c0_i32 = arith.constant 0 : i32
    %c0_i32_0 = arith.constant 0 : i32
    %c0_i32_1 = arith.constant 0 : i32
    %c0_i32_2 = arith.constant 0 : i32
    return %c0_i32, %c0_i32_0, %c0_i32_1 : i32, i32, i32
  }
  func.func @transform_3(%arg0: i32) -> (i32, i32) {
    %c0_i32 = arith.constant 0 : i32
    %c0_i32_0 = arith.constant 0 : i32
    %c0_i32_1 = arith.constant 0 : i32
    return %c0_i32, %c0_i32_0 : i32, i32
  }
  func.func @transform_4(%arg0: i32) -> (i32, i32, i32) {
    %c0_i32 = arith.constant 0 : i32
    %c0_i32_0 = arith.constant 0 : i32
    %c0_i32_1 = arith.constant 0 : i32
    %c0_i32_2 = arith.constant 0 : i32
    return %c0_i32, %c0_i32_0, %c0_i32_1 : i32, i32, i32
  }
  func.func @transform_5(%arg0: i32) -> (i32, i32, i32) {
    %c0_i32 = arith.constant 0 : i32
    %c0_i32_0 = arith.constant 0 : i32
    %c0_i32_1 = arith.constant 0 : i32
    %c0_i32_2 = arith.constant 0 : i32
    return %c0_i32, %c0_i32_0, %c0_i32_1 : i32, i32, i32
  }
  func.func @transform_6(%arg0: i32) -> (i32, i32) {
    %c0_i32 = arith.constant 0 : i32
    %c0_i32_0 = arith.constant 0 : i32
    %c0_i32_1 = arith.constant 0 : i32
    return %c0_i32, %c0_i32_0 : i32, i32
  }
}

module attributes {stable_mosaic.version = 11 : i64} {
  func.func @_gcn_fused_kernel(%arg0: i32, %arg1: memref<128x128xbf16, #tpu.memory_space<vmem>>, %arg2: memref<128x128xbf16, #tpu.memory_space<vmem>>, %arg3: memref<3x128x128xbf16, #tpu.memory_space<vmem>>, %arg4: memref<1x128xf32, #tpu.memory_space<vmem>>, %arg5: memref<2x1x128xf32, #tpu.memory_space<vmem>>, %arg6: memref<2x1x128xf32, #tpu.memory_space<vmem>>, %arg7: memref<128x128xf32, #tpu.memory_space<vmem>>, %arg8: memref<128x128xbf16, #tpu.memory_space<vmem>>) attributes {dimension_semantics = [#tpu.dimension_semantics<arbitrary>], iteration_bounds = array<i64: 1>, scalar_prefetch = 0 : i64, scratch_operands = 1 : i64, tpu.core_type = #tpu.core_type<tc>, window_params = [{pipeline_mode = #tpu.pipeline_mode<synchronous>, transform_indices = @transform_0, window_bounds = array<i64: 128, 128>}, {pipeline_mode = #tpu.pipeline_mode<synchronous>, transform_indices = @transform_1, window_bounds = array<i64: 128, 128>}, {pipeline_mode = #tpu.pipeline_mode<synchronous>, transform_indices = @transform_2, window_bounds = array<i64: 3, 128, 128>}, {pipeline_mode = #tpu.pipeline_mode<synchronous>, transform_indices = @transform_3, window_bounds = array<i64: 1, 128>}, {pipeline_mode = #tpu.pipeline_mode<synchronous>, transform_indices = @transform_4, window_bounds = array<i64: 2, 1, 128>}, {pipeline_mode = #tpu.pipeline_mode<synchronous>, transform_indices = @transform_5, window_bounds = array<i64: 2, 1, 128>}, {pipeline_mode = #tpu.pipeline_mode<synchronous>, transform_indices = @transform_6, window_bounds = array<i64: 128, 128>}]} {
    %0 = tpu.iota {dimensions = array<i32: 0>} : vector<128x1xi32>
    %c64_i32 = arith.constant 64 : i32
    %1 = vector.broadcast %c64_i32 : i32 to vector<128x1xi32>
    %2 = arith.cmpi slt, %0, %1 : vector<128x1xi32>
    %3 = arith.extui %2 : vector<128x1xi1> to vector<128x1xi32>
    %4 = arith.sitofp %3 : vector<128x1xi32> to vector<128x1xf32>
    %c0 = arith.constant 0 : index
    %c0_0 = arith.constant 0 : index
    %5 = vector.load %arg2[%c0, %c0_0] : memref<128x128xbf16, #tpu.memory_space<vmem>>, vector<128x128xbf16>
    %c0_1 = arith.constant 0 : index
    %c0_2 = arith.constant 0 : index
    %6 = vector.load %arg8[%c0_1, %c0_2] : memref<128x128xbf16, #tpu.memory_space<vmem>>, vector<128x128xbf16>
    tpu.vector_store %arg8[%c0_1, %c0_2], %5 {strides = array<i32>} : memref<128x128xbf16, #tpu.memory_space<vmem>>, vector<128x128xbf16>,
    %c0_3 = arith.constant 0 : index
    %c0_4 = arith.constant 0 : index
    %c0_5 = arith.constant 0 : index
    %7 = vector.load %arg3[%c0_3, %c0_4, %c0_5] : memref<3x128x128xbf16, #tpu.memory_space<vmem>>, vector<1x128x128xbf16>
    %8 = vector.shape_cast %7 : vector<1x128x128xbf16> to vector<128x128xbf16>
    %c0_6 = arith.constant 0 : index
    %c0_7 = arith.constant 0 : index
    %9 = vector.load %arg8[%c0_6, %c0_7] : memref<128x128xbf16, #tpu.memory_space<vmem>>, vector<128x128xbf16>
    %cst = arith.constant dense<0.000000e+00> : vector<128x128xf32>
    %10 = tpu.matmul %9, %8, %cst {dimension_numbers = #tpu.dot_dimension_numbers<[1], [0], [0], [1], [0, 0, 1, 1], [], []>} : vector<128x128xbf16>, vector<128x128xbf16>, vector<128x128xf32> -> vector<128x128xf32>
    %c0_8 = arith.constant 0 : index
    %c0_9 = arith.constant 0 : index
    %11 = vector.load %arg1[%c0_8, %c0_9] : memref<128x128xbf16, #tpu.memory_space<vmem>>, vector<128x128xbf16>
    %12 = arith.truncf %10 : vector<128x128xf32> to vector<128x128xbf16>
    %cst_10 = arith.constant dense<0.000000e+00> : vector<128x128xf32>
    %13 = tpu.matmul %11, %12, %cst_10 {dimension_numbers = #tpu.dot_dimension_numbers<[1], [0], [0], [1], [0, 0, 1, 1], [], []>} : vector<128x128xbf16>, vector<128x128xbf16>, vector<128x128xf32> -> vector<128x128xf32>
    %cst_11 = arith.constant dense<0.000000e+00> : vector<128xf32>
    %14 = vector.multi_reduction <add>, %13, %cst_11 [0] : vector<128x128xf32> to vector<128xf32>
    %15 = vector.shape_cast %14 : vector<128xf32> to vector<1x128xf32>
    %cst_12 = arith.constant 1.562500e-02 : f32
    %16 = vector.broadcast %cst_12 : f32 to vector<1x128xf32>
    %17 = arith.mulf %15, %16 : vector<1x128xf32>
    %18 = vector.broadcast %17 : vector<1x128xf32> to vector<128x128xf32>
    %19 = arith.subf %13, %18 : vector<128x128xf32>
    %20 = vector.broadcast %4 : vector<128x1xf32> to vector<128x128xf32>
    %21 = arith.mulf %19, %20 : vector<128x128xf32>
    %22 = arith.mulf %21, %21 : vector<128x128xf32>
    %cst_13 = arith.constant dense<0.000000e+00> : vector<128xf32>
    %23 = vector.multi_reduction <add>, %22, %cst_13 [0] : vector<128x128xf32> to vector<128xf32>
    %24 = vector.shape_cast %23 : vector<128xf32> to vector<1x128xf32>
    %cst_14 = arith.constant 1.562500e-02 : f32
    %25 = vector.broadcast %cst_14 : f32 to vector<1x128xf32>
    %26 = arith.mulf %24, %25 : vector<1x128xf32>
    %27 = vector.broadcast %17 : vector<1x128xf32> to vector<128x128xf32>
    %28 = arith.subf %13, %27 : vector<128x128xf32>
    %cst_15 = arith.constant 9.99999974E-6 : f32
    %29 = vector.broadcast %cst_15 : f32 to vector<1x128xf32>
    %30 = arith.addf %26, %29 : vector<1x128xf32>
    %31 = math.rsqrt %30 : vector<1x128xf32>
    %32 = vector.broadcast %31 : vector<1x128xf32> to vector<128x128xf32>
    %33 = arith.mulf %28, %32 : vector<128x128xf32>
    %c0_16 = arith.constant 0 : index
    %c0_17 = arith.constant 0 : index
    %c0_18 = arith.constant 0 : index
    %34 = vector.load %arg5[%c0_16, %c0_17, %c0_18] : memref<2x1x128xf32, #tpu.memory_space<vmem>>, vector<1x1x128xf32>
    %35 = vector.shape_cast %34 : vector<1x1x128xf32> to vector<1x128xf32>
    %36 = vector.broadcast %35 : vector<1x128xf32> to vector<128x128xf32>
    %37 = arith.mulf %33, %36 : vector<128x128xf32>
    %c0_19 = arith.constant 0 : index
    %c0_20 = arith.constant 0 : index
    %c0_21 = arith.constant 0 : index
    %38 = vector.load %arg6[%c0_19, %c0_20, %c0_21] : memref<2x1x128xf32, #tpu.memory_space<vmem>>, vector<1x1x128xf32>
    %39 = vector.shape_cast %38 : vector<1x1x128xf32> to vector<1x128xf32>
    %40 = vector.broadcast %39 : vector<1x128xf32> to vector<128x128xf32>
    %41 = arith.addf %37, %40 : vector<128x128xf32>
    %cst_22 = arith.constant 0.000000e+00 : f32
    %42 = vector.broadcast %cst_22 : f32 to vector<128x128xf32>
    %43 = arith.maximumf %41, %42 : vector<128x128xf32>
    %44 = arith.truncf %43 : vector<128x128xf32> to vector<128x128xbf16>
    %c0_23 = arith.constant 0 : index
    %c0_24 = arith.constant 0 : index
    %45 = vector.load %arg8[%c0_23, %c0_24] : memref<128x128xbf16, #tpu.memory_space<vmem>>, vector<128x128xbf16>
    tpu.vector_store %arg8[%c0_23, %c0_24], %44 {strides = array<i32>} : memref<128x128xbf16, #tpu.memory_space<vmem>>, vector<128x128xbf16>,
    %c1 = arith.constant 1 : index
    %c0_25 = arith.constant 0 : index
    %c0_26 = arith.constant 0 : index
    %46 = vector.load %arg3[%c1, %c0_25, %c0_26] : memref<3x128x128xbf16, #tpu.memory_space<vmem>>, vector<1x128x128xbf16>
    %47 = vector.shape_cast %46 : vector<1x128x128xbf16> to vector<128x128xbf16>
    %c0_27 = arith.constant 0 : index
    %c0_28 = arith.constant 0 : index
    %48 = vector.load %arg8[%c0_27, %c0_28] : memref<128x128xbf16, #tpu.memory_space<vmem>>, vector<128x128xbf16>
    %cst_29 = arith.constant dense<0.000000e+00> : vector<128x128xf32>
    %49 = tpu.matmul %48, %47, %cst_29 {dimension_numbers = #tpu.dot_dimension_numbers<[1], [0], [0], [1], [0, 0, 1, 1], [], []>} : vector<128x128xbf16>, vector<128x128xbf16>, vector<128x128xf32> -> vector<128x128xf32>
    %c0_30 = arith.constant 0 : index
    %c0_31 = arith.constant 0 : index
    %50 = vector.load %arg1[%c0_30, %c0_31] : memref<128x128xbf16, #tpu.memory_space<vmem>>, vector<128x128xbf16>
    %51 = arith.truncf %49 : vector<128x128xf32> to vector<128x128xbf16>
    %cst_32 = arith.constant dense<0.000000e+00> : vector<128x128xf32>
    %52 = tpu.matmul %50, %51, %cst_32 {dimension_numbers = #tpu.dot_dimension_numbers<[1], [0], [0], [1], [0, 0, 1, 1], [], []>} : vector<128x128xbf16>, vector<128x128xbf16>, vector<128x128xf32> -> vector<128x128xf32>
    %cst_33 = arith.constant dense<0.000000e+00> : vector<128xf32>
    %53 = vector.multi_reduction <add>, %52, %cst_33 [0] : vector<128x128xf32> to vector<128xf32>
    %54 = vector.shape_cast %53 : vector<128xf32> to vector<1x128xf32>
    %cst_34 = arith.constant 1.562500e-02 : f32
    %55 = vector.broadcast %cst_34 : f32 to vector<1x128xf32>
    %56 = arith.mulf %54, %55 : vector<1x128xf32>
    %57 = vector.broadcast %56 : vector<1x128xf32> to vector<128x128xf32>
    %58 = arith.subf %52, %57 : vector<128x128xf32>
    %59 = vector.broadcast %4 : vector<128x1xf32> to vector<128x128xf32>
    %60 = arith.mulf %58, %59 : vector<128x128xf32>
    %61 = arith.mulf %60, %60 : vector<128x128xf32>
    %cst_35 = arith.constant dense<0.000000e+00> : vector<128xf32>
    %62 = vector.multi_reduction <add>, %61, %cst_35 [0] : vector<128x128xf32> to vector<128xf32>
    %63 = vector.shape_cast %62 : vector<128xf32> to vector<1x128xf32>
    %cst_36 = arith.constant 1.562500e-02 : f32
    %64 = vector.broadcast %cst_36 : f32 to vector<1x128xf32>
    %65 = arith.mulf %63, %64 : vector<1x128xf32>
    %66 = vector.broadcast %56 : vector<1x128xf32> to vector<128x128xf32>
    %67 = arith.subf %52, %66 : vector<128x128xf32>
    %cst_37 = arith.constant 9.99999974E-6 : f32
    %68 = vector.broadcast %cst_37 : f32 to vector<1x128xf32>
    %69 = arith.addf %65, %68 : vector<1x128xf32>
    %70 = math.rsqrt %69 : vector<1x128xf32>
    %71 = vector.broadcast %70 : vector<1x128xf32> to vector<128x128xf32>
    %72 = arith.mulf %67, %71 : vector<128x128xf32>
    %c1_38 = arith.constant 1 : index
    %c0_39 = arith.constant 0 : index
    %c0_40 = arith.constant 0 : index
    %73 = vector.load %arg5[%c1_38, %c0_39, %c0_40] : memref<2x1x128xf32, #tpu.memory_space<vmem>>, vector<1x1x128xf32>
    %74 = vector.shape_cast %73 : vector<1x1x128xf32> to vector<1x128xf32>
    %75 = vector.broadcast %74 : vector<1x128xf32> to vector<128x128xf32>
    %76 = arith.mulf %72, %75 : vector<128x128xf32>
    %c1_41 = arith.constant 1 : index
    %c0_42 = arith.constant 0 : index
    %c0_43 = arith.constant 0 : index
    %77 = vector.load %arg6[%c1_41, %c0_42, %c0_43] : memref<2x1x128xf32, #tpu.memory_space<vmem>>, vector<1x1x128xf32>
    %78 = vector.shape_cast %77 : vector<1x1x128xf32> to vector<1x128xf32>
    %79 = vector.broadcast %78 : vector<1x128xf32> to vector<128x128xf32>
    %80 = arith.addf %76, %79 : vector<128x128xf32>
    %cst_44 = arith.constant 0.000000e+00 : f32
    %81 = vector.broadcast %cst_44 : f32 to vector<128x128xf32>
    %82 = arith.maximumf %80, %81 : vector<128x128xf32>
    %83 = arith.truncf %82 : vector<128x128xf32> to vector<128x128xbf16>
    %c0_45 = arith.constant 0 : index
    %c0_46 = arith.constant 0 : index
    %84 = vector.load %arg8[%c0_45, %c0_46] : memref<128x128xbf16, #tpu.memory_space<vmem>>, vector<128x128xbf16>
    tpu.vector_store %arg8[%c0_45, %c0_46], %83 {strides = array<i32>} : memref<128x128xbf16, #tpu.memory_space<vmem>>, vector<128x128xbf16>,
    %c2 = arith.constant 2 : index
    %c0_47 = arith.constant 0 : index
    %c0_48 = arith.constant 0 : index
    %85 = vector.load %arg3[%c2, %c0_47, %c0_48] : memref<3x128x128xbf16, #tpu.memory_space<vmem>>, vector<1x128x128xbf16>
    %86 = vector.shape_cast %85 : vector<1x128x128xbf16> to vector<128x128xbf16>
    %c0_49 = arith.constant 0 : index
    %c0_50 = arith.constant 0 : index
    %87 = vector.load %arg8[%c0_49, %c0_50] : memref<128x128xbf16, #tpu.memory_space<vmem>>, vector<128x128xbf16>
    %cst_51 = arith.constant dense<0.000000e+00> : vector<128x128xf32>
    %88 = tpu.matmul %87, %86, %cst_51 {dimension_numbers = #tpu.dot_dimension_numbers<[1], [0], [0], [1], [0, 0, 1, 1], [], []>} : vector<128x128xbf16>, vector<128x128xbf16>, vector<128x128xf32> -> vector<128x128xf32>
    %c0_52 = arith.constant 0 : index
    %c0_53 = arith.constant 0 : index
    %89 = vector.load %arg1[%c0_52, %c0_53] : memref<128x128xbf16, #tpu.memory_space<vmem>>, vector<128x128xbf16>
    %90 = arith.truncf %88 : vector<128x128xf32> to vector<128x128xbf16>
    %cst_54 = arith.constant dense<0.000000e+00> : vector<128x128xf32>
    %91 = tpu.matmul %89, %90, %cst_54 {dimension_numbers = #tpu.dot_dimension_numbers<[1], [0], [0], [1], [0, 0, 1, 1], [], []>} : vector<128x128xbf16>, vector<128x128xbf16>, vector<128x128xf32> -> vector<128x128xf32>
    %c0_55 = arith.constant 0 : index
    %c0_56 = arith.constant 0 : index
    %92 = vector.load %arg4[%c0_55, %c0_56] : memref<1x128xf32, #tpu.memory_space<vmem>>, vector<1x128xf32>
    %93 = vector.broadcast %92 : vector<1x128xf32> to vector<128x128xf32>
    %94 = arith.addf %91, %93 : vector<128x128xf32>
    %c0_57 = arith.constant 0 : index
    %c0_58 = arith.constant 0 : index
    %95 = vector.load %arg7[%c0_57, %c0_58] : memref<128x128xf32, #tpu.memory_space<vmem>>, vector<128x128xf32>
    tpu.vector_store %arg7[%c0_57, %c0_58], %94 {strides = array<i32>} : memref<128x128xf32, #tpu.memory_space<vmem>>, vector<128x128xf32>,
    return
  }
  func.func @transform_0(%arg0: i32) -> (i32, i32) {
    %c0_i32 = arith.constant 0 : i32
    %c0_i32_0 = arith.constant 0 : i32
    %c0_i32_1 = arith.constant 0 : i32
    return %c0_i32, %c0_i32_0 : i32, i32
  }
  func.func @transform_1(%arg0: i32) -> (i32, i32) {
    %c0_i32 = arith.constant 0 : i32
    %c0_i32_0 = arith.constant 0 : i32
    %c0_i32_1 = arith.constant 0 : i32
    return %c0_i32, %c0_i32_0 : i32, i32
  }
  func.func @transform_2(%arg0: i32) -> (i32, i32, i32) {
    %c0_i32 = arith.constant 0 : i32
    %c0_i32_0 = arith.constant 0 : i32
    %c0_i32_1 = arith.constant 0 : i32
    %c0_i32_2 = arith.constant 0 : i32
    return %c0_i32, %c0_i32_0, %c0_i32_1 : i32, i32, i32
  }
  func.func @transform_3(%arg0: i32) -> (i32, i32) {
    %c0_i32 = arith.constant 0 : i32
    %c0_i32_0 = arith.constant 0 : i32
    %c0_i32_1 = arith.constant 0 : i32
    return %c0_i32, %c0_i32_0 : i32, i32
  }
  func.func @transform_4(%arg0: i32) -> (i32, i32, i32) {
    %c0_i32 = arith.constant 0 : i32
    %c0_i32_0 = arith.constant 0 : i32
    %c0_i32_1 = arith.constant 0 : i32
    %c0_i32_2 = arith.constant 0 : i32
    return %c0_i32, %c0_i32_0, %c0_i32_1 : i32, i32, i32
  }
  func.func @transform_5(%arg0: i32) -> (i32, i32, i32) {
    %c0_i32 = arith.constant 0 : i32
    %c0_i32_0 = arith.constant 0 : i32
    %c0_i32_1 = arith.constant 0 : i32
    %c0_i32_2 = arith.constant 0 : i32
    return %c0_i32, %c0_i32_0, %c0_i32_1 : i32, i32, i32
  }
  func.func @transform_6(%arg0: i32) -> (i32, i32) {
    %c0_i32 = arith.constant 0 : i32
    %c0_i32_0 = arith.constant 0 : i32
    %c0_i32_1 = arith.constant 0 : i32
    return %c0_i32, %c0_i32_0 : i32, i32
  }
}

</mosaic_0001>

<bundles_post_ra>
// kernel: tpu_custom_call.1
= control target key start
LH: loop header
LB: loop body
LE: loop exit
PB: predicated region body
PF: predicated region fallthrough
CT: control target
= control target key end

     0   :  { %11 = vsyncpa [#allocation4], 0  ;;  %s2709_s0 = inlined_call_operand.hbm [shape: bf16[128,128], index: 0, kind: input, shape index: {}]   ;;  %s2710_s1 = inlined_call_operand.hbm [shape: bf16[128,128], index: 1, kind: input, shape index: {}]   ;;  %s2711_s2 = inlined_call_operand.hbm [shape: bf16[3,128,128], index: 2, kind: input, shape index: {}]   ;;  %s2712_s3 = inlined_call_operand.vmem [shape: f32[1,128], index: 3, kind: input, shape index: {}]   ;;  %s2713_s4 = inlined_call_operand.vmem [shape: f32[2,1,128], index: 4, kind: input, shape index: {}]   ;;  %s2714_s5 = inlined_call_operand.vmem [shape: f32[2,1,128], index: 5, kind: input, shape index: {}]   ;;  %s2715_s6 = inlined_call_operand.hbm [shape: f32[128,128], index: 6, kind: output, shape index: {}]  }
   0x1   :  { %12 = vsyncpa [#allocation7], 0 }
   0x2   :  { %13 = vsyncpa [#allocation5], 0  ;;  %s2589_s21 = smov [#allocation6]   ;;  %s2590_s23 = smov [#allocation3]  }
   0x3   :  { %s31_s22 = sshll.u32 %s2589_s21, 4  ;;  %s19_s24 = sshll.u32 %s2590_s23, 4  ;;  %s32_s22 = int_to_ptr.vmem [resolvable:$true] %s31_s22  ;;  %s20_s24 = int_to_ptr.vmem [resolvable:$true] %s19_s24 }
   0x4   :  { %s2511_s25 = scalar_lea.vmem %s32_s22, 1024  ;;  %p2516_p1 = scmp.lt.s32.totalorder %s32_s22, %s32_s22 }
   0x5   :  { %p2512_p0 = scmp.ne.s32.totalorder %s32_s22, %s2511_s25  ;;  %p2517_p2 = scmp.lt.s32.totalorder %s2511_s25, %s2511_s25 }
   0x7   :  { %p2518_p3 = por %p2517_p2, %p2516_p1 }
   0x9   :  { %p2519_p4 = pnand %p2518_p3, %p2512_p0 }
   0xb   :  { %2522 = shalt.err (!%p2519_p4)
}
   0xc   :  { %s2591_s26 = smov 64   ;;  %s2592_s27 = smov 4  }
   0xd   :  { %37 = dma.hbm_to_vmem [thread:$0]  %s2710_s1, 1024, %s32_s22, [#allocation7], %s2591_s26, %s2591_s26, %s2592_s27  }
   0xe   :  { %s2531_s30 = scalar_lea.vmem %s20_s24, 1024  ;;  %p2536_p6 = scmp.lt.s32.totalorder %s20_s24, %s20_s24 }
   0xf   :  { %p2532_p5 = scmp.ne.s32.totalorder %s20_s24, %s2531_s30  ;;  %p2537_p7 = scmp.lt.s32.totalorder %s2531_s30, %s2531_s30 }
  0x11   :  { %p2538_p8 = por %p2537_p7, %p2536_p6 }
  0x13   :  { %p2539_p9 = pnand %p2538_p8, %p2532_p5 }
  0x15   :  { %2542 = shalt.err (!%p2539_p9)
}
  0x16   :  { %25 = dma.hbm_to_vmem [thread:$0]  %s2709_s0, 1024, %s20_s24, [#allocation4], %s2591_s26, %s2591_s26, %s2592_s27  }
  0x17   :  { %s2593_s9 = smov [#allocation8]  }
  0x18   :  { %s43_s10 = sshll.u32 %s2593_s9, 4  ;;  %s44_s10 = int_to_ptr.vmem [resolvable:$true] %s43_s10 }
  0x19   :  { %s2551_s11 = scalar_lea.vmem %s44_s10, 3072  ;;  %p2556_p11 = scmp.lt.s32.totalorder %s44_s10, %s44_s10 }
  0x1a   :  { %p2552_p10 = scmp.ne.s32.totalorder %s44_s10, %s2551_s11  ;;  %p2557_p12 = scmp.lt.s32.totalorder %s2551_s11, %s2551_s11 }
  0x1c   :  { %p2558_p13 = por %p2557_p12, %p2556_p11 }
  0x1e   :  { %p2559_p0 = pnand %p2558_p13, %p2552_p10 }
  0x20   :  { %2562 = shalt.err (!%p2559_p0)
}
  0x21   :  { %49 = dma.hbm_to_vmem [thread:$0]  %s2711_s2, 3072, %s44_s10, [#allocation7], %s2591_s26, %s2591_s26, %s2592_s27  }
  0x22   :  { %2583 = dma.done.wait [#allocation4], 1024  }
  0x23   :  { %2584 = vsyncadd [#allocation4], 4294966272 }
  0x24   :  { %2585 = dma.done.wait [#allocation7], 4096  }
  0x25   :  { %2586 = vsyncadd [#allocation7], 4294963200  ;;  %v2427_v0 = vld [vmem:[#allocation8 + $0x38] sm:$0xff]   ;;  %v2428_v1 = vld [vmem:[#allocation8 + $0x30] sm:$0xff]  }
  0x26   :  { %2227 = vmatprep.subr.bf16.mxu0 %v2427_v0  ;;  %v2429_v2 = vld [vmem:[#allocation8 + $0x28] sm:$0xff]   ;;  %v2430_v3 = vld [vmem:[#allocation8 + $0x20] sm:$0xff]   ;;  %v135_v6 = vld [vmem:[#allocation6 + $0x10] sm:$0xff]  }
  0x27   :  { %2228 = vmatpush3.bf16.msra.mxu0 %v2427_v0  ;;  %v131_v4 = vld [vmem:[#allocation6] sm:$0xff]   ;;  %v133_v5 = vld [vmem:[#allocation6 + $0x8] sm:$0xff]   ;;  %151 = vst [vmem:[#allocation2 + $0x10] sm:$0xff] %v135_v6   ;;  %v137_v7 = vld [vmem:[#allocation6 + $0x18] sm:$0xff]  }
  0x28   :  { %2229 = vmatprep.subr.bf16.mxu0 %v2428_v1  ;;  %147 = vst [vmem:[#allocation2] sm:$0xff] %v131_v4   ;;  %149 = vst [vmem:[#allocation2 + $0x8] sm:$0xff] %v133_v5   ;;  %v139_v8 = vld [vmem:[#allocation6 + $0x20] sm:$0xff]   ;;  %v141_v9 = vld [vmem:[#allocation6 + $0x28] sm:$0xff]  }
  0x29   :  { %v2431_v10 = vld [vmem:[#allocation8 + $0x18] sm:$0xff]   ;;  %153 = vst [vmem:[#allocation2 + $0x18] sm:$0xff] %v137_v7   ;;  %155 = vst [vmem:[#allocation2 + $0x20] sm:$0xff] %v139_v8   ;;  %v143_v11 = vld [vmem:[#allocation6 + $0x30] sm:$0xff]  }
  0x2a   :  { %157 = vst [vmem:[#allocation2 + $0x28] sm:$0xff] %v141_v9   ;;  %v145_v12 = vld [vmem:[#allocation6 + $0x38] sm:$0xff]   ;;  %159 = vst [vmem:[#allocation2 + $0x30] sm:$0xff] %v143_v11   ;;  %v2432_v13 = vld [vmem:[#allocation8 + $0x10] sm:$0xff]  }
  0x2b   :  { %2230 = vmatpush3.bf16.msra.mxu0 %v2428_v1  ;;  %161 = vst [vmem:[#allocation2 + $0x38] sm:$0xff] %v145_v12   ;;  %v2433_v15 = vld [vmem:[#allocation8 + $0x8] sm:$0xff]   ;;  %v2434_v16 = vld [vmem:[#allocation8] sm:$0xff]   ;;  %v2445_v50 = vld [vmem:[#allocation3 + $0x10] sm:$0xff]  }
  0x2c   :  { %2231 = vmatprep.subr.bf16.mxu0 %v2429_v2  ;;  %v2443_v24 = vld [vmem:[#allocation3] sm:$0xff]   ;;  %v2444_v49 = vld [vmem:[#allocation3 + $0x8] sm:$0xff]   ;;  %v2446_v51 = vld [vmem:[#allocation3 + $0x18] sm:$0xff]  }
  0x2d   :  { %2275 = vmatprep.mubr.bf16.mxu1 %v2443_v24  ;;  %v2447_v52 = vld [vmem:[#allocation3 + $0x20] sm:$0xff]   ;;  %v2448_v53 = vld [vmem:[#allocation3 + $0x28] sm:$0xff]   ;;  %v2449_v54 = vld [vmem:[#allocation3 + $0x30] sm:$0xff]  }
  0x2e   :  { %v2437_v18 = vld [vmem:[#allocation2 + $0x10] sm:$0xff]   ;;  %v2450_v55 = vld [vmem:[#allocation3 + $0x38] sm:$0xff]   ;;  %v2453_v58 = vld [vmem:[#allocation8 + $0x68] sm:$0xff]  }
  0x2f   :  { %2232 = vmatpush3.bf16.msra.mxu0 %v2429_v2  ;;  %v2435_v14 = vld [vmem:[#allocation2] sm:$0xff]   ;;  %v2436_v17 = vld [vmem:[#allocation2 + $0x8] sm:$0xff]   ;;  %v2451_v56 = vld [vmem:[#allocation8 + $0x78] sm:$0xff]  }
  0x30   :  { %2233 = vmatprep.subr.bf16.mxu0 %v2430_v3  ;;  %2243 = vmatprep.mubr.bf16.mxu0 %v2435_v14  ;;  %v2438_v19 = vld [vmem:[#allocation2 + $0x18] sm:$0xff]   ;;  %v2439_v20 = vld [vmem:[#allocation2 + $0x20] sm:$0xff]   ;;  %v2452_v57 = vld [vmem:[#allocation8 + $0x70] sm:$0xff]  }
  0x31   :  { %v2440_v21 = vld [vmem:[#allocation2 + $0x28] sm:$0xff]   ;;  %v2441_v22 = vld [vmem:[#allocation2 + $0x30] sm:$0xff]   ;;  %v2454_v60 = vld [vmem:[#allocation8 + $0x60] sm:$0xff]  }
  0x32   :  { %v2442_v23 = vld [vmem:[#allocation2 + $0x38] sm:$0xff]   ;;  %v2457_v8 = vld [vmem:[#allocation8 + $0x48] sm:$0xff]   ;;  %v2458_v9 = vld [vmem:[#allocation8 + $0x40] sm:$0xff]  }
  0x33   :  { %2234 = vmatpush3.bf16.msra.mxu0 %v2430_v3  ;;  %v2455_v63 = vld [vmem:[#allocation8 + $0x58] sm:$0xff]   ;;  %v2456_v3 = vld [vmem:[#allocation8 + $0x50] sm:$0xff]  }
  0x34   :  { %2235 = vmatprep.subr.bf16.mxu0 %v2431_v10 }
  0x37   :  { %2236 = vmatpush3.bf16.msra.mxu0 %v2431_v10 }
  0x38   :  { %2237 = vmatprep.subr.bf16.mxu0 %v2432_v13 }
  0x3b   :  { %2238 = vmatpush3.bf16.msra.mxu0 %v2432_v13 }
  0x3c   :  { %2239 = vmatprep.subr.bf16.mxu0 %v2433_v15 }
  0x3f   :  { %2240 = vmatpush3.bf16.msra.mxu0 %v2433_v15 }
  0x40   :  { %2241 = vmatprep.subr.bf16.mxu0 %v2434_v16 }
  0x43   :  { %2242 = vmatpush3.bf16.msra.mxu0 %v2434_v16 }
  0x44   :  { %2291 = vmatprep.subr.bf16.mxu0 %v2451_v56 }
  0x46   :  { %2244 = vmatmul.mubr.bf16.vlgmr.msra.gmra.mxu0 %v2436_v17 }
  0x47   :  { %2247 = vmatprep.mubr.bf16.mxu0 %v2437_v18  ;;  %2292 = vmatpush3.bf16.msra.mxu0 %v2451_v56 }
  0x48   :  { %2293 = vmatprep.subr.bf16.mxu0 %v2452_v57 }
  0x4b   :  { %2294 = vmatpush3.bf16.msra.mxu0 %v2452_v57 }
  0x4c   :  { %2295 = vmatprep.subr.bf16.mxu0 %v2453_v58 }
  0x4e   :  { %2248 = vmatmul.mubr.bf16.gmra.mxu0 %v2438_v19 }
  0x4f   :  { %2251 = vmatprep.mubr.bf16.mxu0 %v2439_v20  ;;  %2296 = vmatpush3.bf16.msra.mxu0 %v2453_v58 }
  0x50   :  { %2297 = vmatprep.subr.bf16.mxu0 %v2454_v60 }
  0x53   :  { %2298 = vmatpush3.bf16.msra.mxu0 %v2454_v60 }
  0x54   :  { %2299 = vmatprep.subr.bf16.mxu0 %v2455_v63 }
  0x56   :  { %2252 = vmatmul.mubr.bf16.gmra.mxu0 %v2440_v21 }
  0x57   :  { %2255 = vmatprep.mubr.bf16.mxu0 %v2441_v22  ;;  %2300 = vmatpush3.bf16.msra.mxu0 %v2455_v63 }
  0x58   :  { %2301 = vmatprep.subr.bf16.mxu0 %v2456_v3 }
  0x5b   :  { %2302 = vmatpush3.bf16.msra.mxu0 %v2456_v3 }
  0x5c   :  { %2303 = vmatprep.subr.bf16.mxu0 %v2457_v8 }
  0x5e   :  { %2256 = vmatmul.mubr.bf16.gmra.mxu0 %v2442_v23 }
  0x5f   :  { %2304 = vmatpush3.bf16.msra.mxu0 %v2457_v8 }
  0x60   :  { %2305 = vmatprep.subr.bf16.mxu0 %v2458_v9 }
  0x63   :  { %2306 = vmatpush3.bf16.msra.mxu0 %v2458_v9 }
 0x106   :  { %v2245_v25 = vpop.f32.mrf.mxu0 }
 0x108   :  { %v325_v26 = vpop.f32.mrf.mxu0 }
 0x10a   :  { %v2246_v27 = vpop.f32.mrf.mxu0 }
 0x10b   :  { %v405_v47 = vpack.c.bf16 %v2246_v27, %v2245_v25 }
 0x10c   :  { %v328_v28 = vpop.f32.mrf.mxu0 }
 0x10d   :  { %v404_v48 = vpack.c.bf16 %v328_v28, %v325_v26 }
 0x10e   :  { %v2249_v29 = vpop.f32.mrf.mxu0 }
 0x110   :  { %v341_v30 = vpop.f32.mrf.mxu0 }
 0x112   :  { %v2250_v31 = vpop.f32.mrf.mxu0 }
 0x113   :  { %v407_v45 = vpack.c.bf16 %v2250_v31, %v2249_v29 }
 0x114   :  { %v344_v32 = vpop.f32.mrf.mxu0 }
 0x115   :  { %v406_v46 = vpack.c.bf16 %v344_v32, %v341_v30 }
 0x116   :  { %v2253_v33 = vpop.f32.mrf.mxu0 }
 0x118   :  { %v357_v34 = vpop.f32.mrf.mxu0 }
 0x11a   :  { %v2254_v35 = vpop.f32.mrf.mxu0 }
 0x11b   :  { %v409_v43 = vpack.c.bf16 %v2254_v35, %v2253_v33 }
 0x11c   :  { %v360_v36 = vpop.f32.mrf.mxu0 }
 0x11d   :  { %v408_v44 = vpack.c.bf16 %v360_v36, %v357_v34 }
 0x11e   :  { %v2257_v37 = vpop.f32.mrf.mxu0 }
 0x120   :  { %v373_v38 = vpop.f32.mrf.mxu0 }
 0x122   :  { %v2258_v39 = vpop.f32.mrf.mxu0 }
 0x123   :  { %v411_v40 = vpack.c.bf16 %v2258_v39, %v2257_v37 }
 0x124   :  { %v376_v41 = vpop.f32.mrf.mxu0 }
 0x125   :  { %v410_v42 = vpack.c.bf16 %v376_v41, %v373_v38  ;;  %2259 = vmatprep.subr.bf16.mxu1 %v411_v40 }
 0x126   :  { %2260 = vmatpush3.bf16.msra.mxu1 %v411_v40 }
 0x127   :  { %2261 = vmatprep.subr.bf16.mxu1 %v410_v42 }
 0x12a   :  { %2262 = vmatpush3.bf16.msra.mxu1 %v410_v42 }
 0x12b   :  { %2263 = vmatprep.subr.bf16.mxu1 %v409_v43 }
 0x12e   :  { %2264 = vmatpush3.bf16.msra.mxu1 %v409_v43 }
 0x12f   :  { %2265 = vmatprep.subr.bf16.mxu1 %v408_v44 }
 0x132   :  { %2266 = vmatpush3.bf16.msra.mxu1 %v408_v44 }
 0x133   :  { %2267 = vmatprep.subr.bf16.mxu1 %v407_v45 }
 0x136   :  { %2268 = vmatpush3.bf16.msra.mxu1 %v407_v45 }
 0x137   :  { %2269 = vmatprep.subr.bf16.mxu1 %v406_v46 }
 0x13a   :  { %2270 = vmatpush3.bf16.msra.mxu1 %v406_v46 }
 0x13b   :  { %2271 = vmatprep.subr.bf16.mxu1 %v405_v47 }
 0x13e   :  { %2272 = vmatpush3.bf16.msra.mxu1 %v405_v47 }
 0x13f   :  { %2273 = vmatprep.subr.bf16.mxu1 %v404_v48 }
 0x142   :  { %2274 = vmatpush3.bf16.msra.mxu1 %v404_v48 }
 0x145   :  { %2276 = vmatmul.mubr.bf16.vlgmr.msra.gmra.mxu1 %v2444_v49 }
 0x146   :  { %2279 = vmatprep.mubr.bf16.mxu1 %v2445_v50 }
 0x14d   :  { %2280 = vmatmul.mubr.bf16.gmra.mxu1 %v2446_v51 }
 0x14e   :  { %2283 = vmatprep.mubr.bf16.mxu1 %v2447_v52 }
 0x155   :  { %2284 = vmatmul.mubr.bf16.gmra.mxu1 %v2448_v53 }
 0x156   :  { %2287 = vmatprep.mubr.bf16.mxu1 %v2449_v54 }
 0x15d   :  { %2288 = vmatmul.mubr.bf16.gmra.mxu1 %v2450_v55 }
 0x205   :  { %v2277_v59 = vpop.f32.mrf.mxu1 }
 0x207   :  { %v494_v61 = vpop.f32.mrf.mxu1 }
 0x209   :  { %v2278_v62 = vpop.f32.mrf.mxu1 }
 0x20b   :  { %v497_v0 = vpop.f32.mrf.mxu1 }
 0x20c   :  { %v557_v1 = vadd.f32 %v497_v0, %v494_v61 }
 0x20d   :  { %v2281_v2 = vpop.f32.mrf.mxu1 }
 0x20e   :  { %v558_v4 = vadd.f32 %v2277_v59, %v557_v1 }
 0x20f   :  { %v510_v5 = vpop.f32.mrf.mxu1 }
 0x210   :  { %v559_v6 = vadd.f32 %v2278_v62, %v558_v4 }
 0x211   :  { %v2282_v7 = vpop.f32.mrf.mxu1 }
 0x212   :  { %v560_v10 = vadd.f32 %v559_v6, %v510_v5 }
 0x213   :  { %v513_v11 = vpop.f32.mrf.mxu1 }
 0x214   :  { %v561_v12 = vadd.f32 %v560_v10, %v513_v11 }
 0x215   :  { %v2285_v13 = vpop.f32.mrf.mxu1 }
 0x216   :  { %v562_v14 = vadd.f32 %v2281_v2, %v561_v12 }
 0x217   :  { %v526_v15 = vpop.f32.mrf.mxu1 }
 0x218   :  { %v563_v16 = vadd.f32 %v2282_v7, %v562_v14 }
 0x219   :  { %v2286_v17 = vpop.f32.mrf.mxu1 }
 0x21a   :  { %v564_v18 = vadd.f32 %v563_v16, %v526_v15 }
 0x21b   :  { %v529_v19 = vpop.f32.mrf.mxu1 }
 0x21c   :  { %v565_v20 = vadd.f32 %v564_v18, %v529_v19 }
 0x21d   :  { %v2289_v21 = vpop.f32.mrf.mxu1 }
 0x21e   :  { %v566_v22 = vadd.f32 %v2285_v13, %v565_v20 }
 0x21f   :  { %v542_v23 = vpop.f32.mrf.mxu1 }
 0x220   :  { %v567_v24 = vadd.f32 %v2286_v17, %v566_v22 }
 0x221   :  { %v2290_v25 = vpop.f32.mrf.mxu1 }
 0x222   :  { %v568_v26 = vadd.f32 %v567_v24, %v542_v23 }
 0x223   :  { %v545_v27 = vpop.f32.mrf.mxu1 }
 0x224   :  { %v569_v28 = vadd.f32 %v568_v26, %v545_v27 }
 0x226   :  { %v570_v29 = vadd.f32 %v2289_v21, %v569_v28 }
 0x228   :  { %v571_v30 = vadd.f32 %v2290_v25, %v570_v29 }
 0x22a   :  { %v572_v31 = vrot.slane %v571_v30, 4 }
 0x22c   :  { %v573_v32 = vadd.f32 %v572_v31, %v571_v30 }
 0x22e   :  { %v574_v33 = vrot.slane %v573_v32, 2 }
 0x230   :  { %v575_v34 = vadd.f32 %v574_v33, %v573_v32 }
 0x232   :  { %v576_v35 = vrot.slane %v575_v34, 1 }
 0x234   :  { %v577_v36 = vadd.f32 %v576_v35, %v575_v34 }
 0x236   :  { %v578_v37 = vmul.f32 0.015625, %v577_v36 }
 0x238   :  { %v2641_v38 = vsub.f32 %v494_v61, %v578_v37  ;;  %v2643_v39 = vsub.f32 %v497_v0, %v578_v37  ;;  %v2645_v40 = vsub.f32 %v2277_v59, %v578_v37  ;;  %v2651_v43 = vsub.f32 %v2278_v62, %v578_v37 }
 0x239   :  { %v2653_v44 = vsub.f32 %v510_v5, %v578_v37  ;;  %v584_v47 = vsub.f32 %v513_v11, %v578_v37  ;;  %v585_v50 = vsub.f32 %v2281_v2, %v578_v37  ;;  %v587_v51 = vsub.f32 %v526_v15, %v578_v37 }
 0x23a   :  { %v611_v41 = vmul.f32 %v2641_v38, %v2641_v38  ;;  %v612_v42 = vmul.f32 %v2643_v39, %v2643_v39  ;;  %v613_v45 = vmul.f32 %v2645_v40, %v2645_v40  ;;  %v614_v48 = vmul.f32 %v2651_v43, %v2651_v43 }
 0x23b   :  { %v615_v52 = vmul.f32 %v2653_v44, %v2653_v44  ;;  %v586_v54 = vsub.f32 %v2282_v7, %v578_v37  ;;  %v588_v55 = vsub.f32 %v529_v19, %v578_v37  ;;  %v616_v56 = vmul.f32 %v584_v47, %v584_v47 }
 0x23c   :  { %v627_v46 = vadd.f32 %v612_v42, %v611_v41  ;;  %v589_v58 = vsub.f32 %v2285_v13, %v578_v37  ;;  %v603_v59 = vmul.f32 0.0, %v587_v51  ;;  %v617_v60 = vmul.f32 %v585_v50, %v585_v50 }
 0x23d   :  { %v590_v62 = vsub.f32 %v2286_v17, %v578_v37  ;;  %v604_v63 = vmul.f32 0.0, %v588_v55  ;;  %v618_v0 = vmul.f32 %v586_v54, %v586_v54  ;;  %v591_v3 = vsub.f32 %v542_v23, %v578_v37 }
 0x23e   :  { %v628_v49 = vadd.f32 %v627_v46, %v613_v45  ;;  %v605_v4 = vmul.f32 0.0, %v589_v58  ;;  %v619_v2 = vmul.f32 %v603_v59, %v603_v59  ;;  %v592_v6 = vsub.f32 %v545_v27, %v578_v37 }
 0x23f   :  { %v606_v8 = vmul.f32 0.0, %v590_v62  ;;  %v620_v9 = vmul.f32 %v604_v63, %v604_v63  ;;  %v593_v7 = vsub.f32 %v2289_v21, %v578_v37  ;;  %v607_v11 = vmul.f32 0.0, %v591_v3 }
 0x240   :  { %v629_v53 = vadd.f32 %v628_v49, %v614_v48  ;;  %v621_v12 = vmul.f32 %v605_v4, %v605_v4  ;;  %v594_v13 = vsub.f32 %v2290_v25, %v578_v37  ;;  %v608_v15 = vmul.f32 0.0, %v592_v6 }
 0x241   :  { %v622_v16 = vmul.f32 %v606_v8, %v606_v8  ;;  %v609_v17 = vmul.f32 0.0, %v593_v7  ;;  %v623_v19 = vmul.f32 %v607_v11, %v607_v11 }
 0x242   :  { %v630_v57 = vadd.f32 %v629_v53, %v615_v52  ;;  %v610_v22 = vmul.f32 0.0, %v594_v13  ;;  %v624_v23 = vmul.f32 %v608_v15, %v608_v15 }
 0x243   :  { %v625_v26 = vmul.f32 %v609_v17, %v609_v17 }
 0x244   :  { %v631_v61 = vadd.f32 %v630_v57, %v616_v56  ;;  %v626_v27 = vmul.f32 %v610_v22, %v610_v22  ;;  %v1918_v56 = vld [vmem:[%s2713_s4] ss:$0 sm:$0xff] }
 0x246   :  { %v632_v1 = vadd.f32 %v631_v61, %v617_v60 }
 0x248   :  { %v633_v5 = vadd.f32 %v632_v1, %v618_v0 }
 0x24a   :  { %v634_v10 = vadd.f32 %v633_v5, %v619_v2  ;;  %v1919_v2 = vld [vmem:[%s2714_s5] ss:$0 sm:$0xff] }
 0x24c   :  { %v635_v14 = vadd.f32 %v634_v10, %v620_v9 }
 0x24e   :  { %v636_v18 = vadd.f32 %v635_v14, %v621_v12 }
 0x250   :  { %v637_v20 = vadd.f32 %v636_v18, %v622_v16 }
 0x252   :  { %v638_v24 = vadd.f32 %v637_v20, %v623_v19 }
 0x254   :  { %v639_v28 = vadd.f32 %v638_v24, %v624_v23 }
 0x256   :  { %v640_v29 = vadd.f32 %v639_v28, %v625_v26 }
 0x258   :  { %v641_v30 = vadd.f32 %v640_v29, %v626_v27 }
 0x25a   :  { %v642_v31 = vrot.slane %v641_v30, 4 }
 0x25c   :  { %v643_v21 = vadd.f32 %v642_v31, %v641_v30 }
 0x25e   :  { %v644_v32 = vrot.slane %v643_v21, 2 }
 0x260   :  { %v645_v33 = vadd.f32 %v644_v32, %v643_v21 }
 0x262   :  { %v646_v34 = vrot.slane %v645_v33, 1 }
 0x264   :  { %v647_v25 = vadd.f32 %v646_v34, %v645_v33 }
 0x266   :  { %v648_v35 = vmul.f32 0.015625, %v647_v25 }
 0x268   :  { %v649_v36 = vadd.f32 1e-05, %v648_v35 }
 0x26a   :  { %2499 = vrsqrt.f32 %v649_v36 }
 0x277   :  { %v2500_v37 = vpop.eup %2499 }
 0x278   :  { %v651_v41 = vmul.f32 %v2500_v37, %v2641_v38  ;;  %v652_v42 = vmul.f32 %v2500_v37, %v2643_v39  ;;  %v653_v45 = vmul.f32 %v2500_v37, %v2645_v40  ;;  %v654_v46 = vmul.f32 %v2500_v37, %v2651_v43 }
 0x279   :  { %v655_v48 = vmul.f32 %v2500_v37, %v2653_v44  ;;  %v656_v49 = vmul.f32 %v2500_v37, %v584_v47  ;;  %v657_v52 = vmul.f32 %v2500_v37, %v585_v50  ;;  %v658_v53 = vmul.f32 %v2500_v37, %v586_v54 }
 0x27a   :  { %v659_v57 = vmul.f32 %v2500_v37, %v587_v51  ;;  %v660_v59 = vmul.f32 %v2500_v37, %v588_v55  ;;  %v661_v60 = vmul.f32 %v2500_v37, %v589_v58  ;;  %v662_v61 = vmul.f32 %v2500_v37, %v590_v62 }
 0x27b   :  { %v663_v38 = vmul.f32 %v2500_v37, %v591_v3  ;;  %v664_v63 = vmul.f32 %v2500_v37, %v592_v6  ;;  %v665_v39 = vmul.f32 %v2500_v37, %v593_v7  ;;  %v666_v0 = vmul.f32 %v2500_v37, %v594_v13 }
 0x27c   :  { %v674_v40 = vmul.f32 %v1918_v56, %v651_v41  ;;  %v675_v1 = vmul.f32 %v1918_v56, %v652_v42  ;;  %v676_v43 = vmul.f32 %v1918_v56, %v653_v45  ;;  %v677_v4 = vmul.f32 %v1918_v56, %v654_v46 }
 0x27d   :  { %v678_v44 = vmul.f32 %v1918_v56, %v655_v48  ;;  %v679_v47 = vmul.f32 %v1918_v56, %v656_v49  ;;  %v680_v50 = vmul.f32 %v1918_v56, %v657_v52  ;;  %v681_v54 = vmul.f32 %v1918_v56, %v658_v53 }
 0x27e   :  { %v682_v51 = vmul.f32 %v1918_v56, %v659_v57  ;;  %v683_v55 = vmul.f32 %v1918_v56, %v660_v59  ;;  %v684_v58 = vmul.f32 %v1918_v56, %v661_v60  ;;  %v685_v62 = vmul.f32 %v1918_v56, %v662_v61 }
 0x27f   :  { %v686_v3 = vmul.f32 %v1918_v56, %v663_v38  ;;  %v687_v5 = vmul.f32 %v1918_v56, %v664_v63  ;;  %v688_v6 = vmul.f32 %v1918_v56, %v665_v39  ;;  %v689_v8 = vmul.f32 %v1918_v56, %v666_v0 }
 0x280   :  { %v697_v9 = vadd.f32 %v1919_v2, %v674_v40  ;;  %v698_v10 = vadd.f32 %v1919_v2, %v675_v1  ;;  %v699_v7 = vadd.f32 %v1919_v2, %v676_v43  ;;  %v700_v11 = vadd.f32 %v1919_v2, %v677_v4  ;;  %v2467_v1 = vld [vmem:[#allocation3] sm:$0xff]  }
 0x281   :  { %v701_v12 = vadd.f32 %v1919_v2, %v678_v44  ;;  %v702_v14 = vadd.f32 %v1919_v2, %v679_v47  ;;  %v703_v13 = vadd.f32 %v1919_v2, %v680_v50  ;;  %v704_v15 = vadd.f32 %v1919_v2, %v681_v54  ;;  %2339 = vmatprep.mubr.bf16.mxu1 %v2467_v1 }
 0x282   :  { %v705_v16 = vadd.f32 %v1919_v2, %v682_v51  ;;  %v706_v18 = vadd.f32 %v1919_v2, %v683_v55  ;;  %v707_v17 = vadd.f32 %v1919_v2, %v684_v58  ;;  %v708_v19 = vadd.f32 %v1919_v2, %v685_v62 }
 0x283   :  { %v709_v20 = vadd.f32 %v1919_v2, %v686_v3  ;;  %v710_v22 = vadd.f32 %v1919_v2, %v687_v5  ;;  %v711_v23 = vadd.f32 %v1919_v2, %v688_v6  ;;  %v712_v24 = vadd.f32 %v1919_v2, %v689_v8 }
 0x284   :  { %v713_v26 = vmax.f32 %v697_v9, 0.0  ;;  %v714_v28 = vmax.f32 %v698_v10, 0.0  ;;  %v715_v27 = vmax.f32 %v699_v7, 0.0  ;;  %v716_v29 = vmax.f32 %v700_v11, 0.0 }
 0x285   :  { %v717_v30 = vmax.f32 %v701_v12, 0.0  ;;  %v718_v31 = vmax.f32 %v702_v14, 0.0  ;;  %v719_v21 = vmax.f32 %v703_v13, 0.0  ;;  %v720_v32 = vmax.f32 %v704_v15, 0.0 }
 0x286   :  { %v721_v33 = vmax.f32 %v705_v16, 0.0  ;;  %v722_v34 = vmax.f32 %v706_v18, 0.0  ;;  %v723_v25 = vmax.f32 %v707_v17, 0.0  ;;  %v724_v35 = vmax.f32 %v708_v19, 0.0  ;;  %v2468_v18 = vld [vmem:[#allocation3 + $0x8] sm:$0xff]   ;;  %v2469_v17 = vld [vmem:[#allocation3 + $0x10] sm:$0xff]  }
 0x287   :  { %v725_v36 = vmax.f32 %v709_v20, 0.0  ;;  %v726_v37 = vmax.f32 %v710_v22, 0.0  ;;  %v727_v41 = vmax.f32 %v711_v23, 0.0  ;;  %v728_v42 = vmax.f32 %v712_v24, 0.0  ;;  %v2470_v19 = vld [vmem:[#allocation3 + $0x18] sm:$0xff]   ;;  %v2471_v20 = vld [vmem:[#allocation3 + $0x20] sm:$0xff]  }
 0x288   :  { %v2040_v45 = vpack.c.bf16 %v714_v28, %v713_v26  ;;  %v2045_v46 = vpack.c.bf16 %v716_v29, %v715_v27  ;;  %v2050_v48 = vpack.c.bf16 %v718_v31, %v717_v30  ;;  %v2055_v49 = vpack.c.bf16 %v720_v32, %v719_v21  ;;  %v2472_v22 = vld [vmem:[#allocation3 + $0x28] sm:$0xff]   ;;  %v2473_v23 = vld [vmem:[#allocation3 + $0x30] sm:$0xff]   ;;  %v2474_v24 = vld [vmem:[#allocation3 + $0x38] sm:$0xff]  }
 0x289   :  { %v2060_v52 = vpack.c.bf16 %v722_v34, %v721_v33  ;;  %v2065_v53 = vpack.c.bf16 %v724_v35, %v723_v25  ;;  %v2070_v56 = vpack.c.bf16 %v726_v37, %v725_v36  ;;  %v2075_v57 = vpack.c.bf16 %v728_v42, %v727_v41  ;;  %v2475_v26 = vld [vmem:[#allocation8 + $0xb8] sm:$0xff]   ;;  %v2476_v28 = vld [vmem:[#allocation8 + $0xb0] sm:$0xff]   ;;  %v2477_v27 = vld [vmem:[#allocation8 + $0xa8] sm:$0xff]  }
 0x28a   :  { %2041 = vst [vmem:[#allocation2] sm:$0xff] %v2040_v45   ;;  %2117 = vst [vmem:[#allocation2 + $0x8] sm:$0xff] %v2045_v46   ;;  %2355 = vmatprep.subr.bf16.mxu0 %v2475_v26  ;;  %v2478_v30 = vld [vmem:[#allocation8 + $0xa0] sm:$0xff]   ;;  %v2479_v32 = vld [vmem:[#allocation8 + $0x98] sm:$0xff]  }
 0x28b   :  { %2118 = vst [vmem:[#allocation2 + $0x10] sm:$0xff] %v2050_v48   ;;  %2119 = vst [vmem:[#allocation2 + $0x18] sm:$0xff] %v2055_v49   ;;  %v2480_v35 = vld [vmem:[#allocation8 + $0x90] sm:$0xff]   ;;  %v2481_v45 = vld [vmem:[#allocation8 + $0x88] sm:$0xff]  }
 0x28c   :  { %2122 = vst [vmem:[#allocation2 + $0x30] sm:$0xff] %v2070_v56   ;;  %2120 = vst [vmem:[#allocation2 + $0x20] sm:$0xff] %v2060_v52   ;;  %v2482_v46 = vld [vmem:[#allocation8 + $0x80] sm:$0xff]  }
 0x28d   :  { %2121 = vst [vmem:[#allocation2 + $0x28] sm:$0xff] %v2065_v53   ;;  %2123 = vst [vmem:[#allocation2 + $0x38] sm:$0xff] %v2075_v57  }
 0x291   :  { %v2459_v59 = vld [vmem:[#allocation2] sm:$0xff]   ;;  %v2460_v60 = vld [vmem:[#allocation2 + $0x8] sm:$0xff]  }
 0x292   :  { %2307 = vmatprep.mubr.bf16.mxu0 %v2459_v59  ;;  %v2461_v61 = vld [vmem:[#allocation2 + $0x10] sm:$0xff]   ;;  %v2462_v38 = vld [vmem:[#allocation2 + $0x18] sm:$0xff]  }
 0x293   :  { %2308 = vmatmul.mubr.bf16.vlgmr.msra.gmra.mxu0 %v2460_v60  ;;  %v2463_v63 = vld [vmem:[#allocation2 + $0x20] sm:$0xff]   ;;  %v2465_v0 = vld [vmem:[#allocation2 + $0x30] sm:$0xff]  }
 0x294   :  { %2311 = vmatprep.mubr.bf16.mxu0 %v2461_v61  ;;  %v2464_v39 = vld [vmem:[#allocation2 + $0x28] sm:$0xff]   ;;  %v2466_v40 = vld [vmem:[#allocation2 + $0x38] sm:$0xff]   ;;  %2356 = vmatpush3.bf16.msra.mxu0 %v2475_v26 }
 0x295   :  { %2357 = vmatprep.subr.bf16.mxu0 %v2476_v28 }
 0x298   :  { %2358 = vmatpush3.bf16.msra.mxu0 %v2476_v28 }
 0x299   :  { %2359 = vmatprep.subr.bf16.mxu0 %v2477_v27 }
 0x29b   :  { %2312 = vmatmul.mubr.bf16.gmra.mxu0 %v2462_v38 }
 0x29c   :  { %2315 = vmatprep.mubr.bf16.mxu0 %v2463_v63  ;;  %2360 = vmatpush3.bf16.msra.mxu0 %v2477_v27 }
 0x29d   :  { %2361 = vmatprep.subr.bf16.mxu0 %v2478_v30 }
 0x2a0   :  { %2362 = vmatpush3.bf16.msra.mxu0 %v2478_v30 }
 0x2a1   :  { %2363 = vmatprep.subr.bf16.mxu0 %v2479_v32 }
 0x2a3   :  { %2316 = vmatmul.mubr.bf16.gmra.mxu0 %v2464_v39 }
 0x2a4   :  { %2319 = vmatprep.mubr.bf16.mxu0 %v2465_v0  ;;  %2364 = vmatpush3.bf16.msra.mxu0 %v2479_v32 }
 0x2a5   :  { %2365 = vmatprep.subr.bf16.mxu0 %v2480_v35 }
 0x2a8   :  { %2366 = vmatpush3.bf16.msra.mxu0 %v2480_v35 }
 0x2a9   :  { %2367 = vmatprep.subr.bf16.mxu0 %v2481_v45 }
 0x2ab   :  { %2320 = vmatmul.mubr.bf16.gmra.mxu0 %v2466_v40 }
 0x2ac   :  { %2368 = vmatpush3.bf16.msra.mxu0 %v2481_v45 }
 0x2ad   :  { %2369 = vmatprep.subr.bf16.mxu0 %v2482_v46 }
 0x2b0   :  { %2370 = vmatpush3.bf16.msra.mxu0 %v2482_v46 }
 0x353   :  { %v2309_v43 = vpop.f32.mrf.mxu0 }
 0x355   :  { %v972_v4 = vpop.f32.mrf.mxu0 }
 0x357   :  { %v2310_v44 = vpop.f32.mrf.mxu0 }
 0x358   :  { %v1052_v15 = vpack.c.bf16 %v2310_v44, %v2309_v43 }
 0x359   :  { %v975_v47 = vpop.f32.mrf.mxu0 }
 0x35a   :  { %v1051_v16 = vpack.c.bf16 %v975_v47, %v972_v4 }
 0x35b   :  { %v2313_v50 = vpop.f32.mrf.mxu0 }
 0x35d   :  { %v988_v54 = vpop.f32.mrf.mxu0 }
 0x35f   :  { %v2314_v2 = vpop.f32.mrf.mxu0 }
 0x360   :  { %v1054_v14 = vpack.c.bf16 %v2314_v2, %v2313_v50 }
 0x361   :  { %v991_v51 = vpop.f32.mrf.mxu0 }
 0x362   :  { %v1053_v13 = vpack.c.bf16 %v991_v51, %v988_v54 }
 0x363   :  { %v2317_v55 = vpop.f32.mrf.mxu0 }
 0x365   :  { %v1004_v58 = vpop.f32.mrf.mxu0 }
 0x367   :  { %v2318_v62 = vpop.f32.mrf.mxu0 }
 0x368   :  { %v1056_v11 = vpack.c.bf16 %v2318_v62, %v2317_v55 }
 0x369   :  { %v1007_v3 = vpop.f32.mrf.mxu0 }
 0x36a   :  { %v1055_v12 = vpack.c.bf16 %v1007_v3, %v1004_v58 }
 0x36b   :  { %v2321_v5 = vpop.f32.mrf.mxu0 }
 0x36d   :  { %v1020_v6 = vpop.f32.mrf.mxu0 }
 0x36f   :  { %v2322_v8 = vpop.f32.mrf.mxu0 }
 0x370   :  { %v1058_v9 = vpack.c.bf16 %v2322_v8, %v2321_v5 }
 0x371   :  { %v1023_v10 = vpop.f32.mrf.mxu0 }
 0x372   :  { %v1057_v7 = vpack.c.bf16 %v1023_v10, %v1020_v6  ;;  %2323 = vmatprep.subr.bf16.mxu1 %v1058_v9 }
 0x373   :  { %2324 = vmatpush3.bf16.msra.mxu1 %v1058_v9 }
 0x374   :  { %2325 = vmatprep.subr.bf16.mxu1 %v1057_v7 }
 0x377   :  { %2326 = vmatpush3.bf16.msra.mxu1 %v1057_v7 }
 0x378   :  { %2327 = vmatprep.subr.bf16.mxu1 %v1056_v11 }
 0x37b   :  { %2328 = vmatpush3.bf16.msra.mxu1 %v1056_v11 }
 0x37c   :  { %2329 = vmatprep.subr.bf16.mxu1 %v1055_v12 }
 0x37f   :  { %2330 = vmatpush3.bf16.msra.mxu1 %v1055_v12 }
 0x380   :  { %2331 = vmatprep.subr.bf16.mxu1 %v1054_v14 }
 0x383   :  { %2332 = vmatpush3.bf16.msra.mxu1 %v1054_v14 }
 0x384   :  { %2333 = vmatprep.subr.bf16.mxu1 %v1053_v13 }
 0x387   :  { %2334 = vmatpush3.bf16.msra.mxu1 %v1053_v13 }
 0x388   :  { %2335 = vmatprep.subr.bf16.mxu1 %v1052_v15 }
 0x38b   :  { %2336 = vmatpush3.bf16.msra.mxu1 %v1052_v15 }
 0x38c   :  { %2337 = vmatprep.subr.bf16.mxu1 %v1051_v16 }
 0x38f   :  { %2338 = vmatpush3.bf16.msra.mxu1 %v1051_v16 }
 0x392   :  { %2340 = vmatmul.mubr.bf16.vlgmr.msra.gmra.mxu1 %v2468_v18 }
 0x393   :  { %2343 = vmatprep.mubr.bf16.mxu1 %v2469_v17 }
 0x39a   :  { %2344 = vmatmul.mubr.bf16.gmra.mxu1 %v2470_v19 }
 0x39b   :  { %2347 = vmatprep.mubr.bf16.mxu1 %v2471_v20 }
 0x3a2   :  { %2348 = vmatmul.mubr.bf16.gmra.mxu1 %v2472_v22 }
 0x3a3   :  { %2351 = vmatprep.mubr.bf16.mxu1 %v2473_v23 }
 0x3aa   :  { %2352 = vmatmul.mubr.bf16.gmra.mxu1 %v2474_v24 }
 0x452   :  { %v2341_v29 = vpop.f32.mrf.mxu1 }
 0x454   :  { %v1141_v31 = vpop.f32.mrf.mxu1 }
 0x456   :  { %v2342_v21 = vpop.f32.mrf.mxu1 }
 0x458   :  { %v1144_v33 = vpop.f32.mrf.mxu1 }
 0x459   :  { %v1204_v34 = vadd.f32 %v1144_v33, %v1141_v31 }
 0x45a   :  { %v2345_v25 = vpop.f32.mrf.mxu1 }
 0x45b   :  { %v1205_v36 = vadd.f32 %v2341_v29, %v1204_v34 }
 0x45c   :  { %v1157_v37 = vpop.f32.mrf.mxu1 }
 0x45d   :  { %v1206_v41 = vadd.f32 %v2342_v21, %v1205_v36 }
 0x45e   :  { %v2346_v42 = vpop.f32.mrf.mxu1 }
 0x45f   :  { %v1207_v48 = vadd.f32 %v1206_v41, %v1157_v37 }
 0x460   :  { %v1160_v49 = vpop.f32.mrf.mxu1 }
 0x461   :  { %v1208_v52 = vadd.f32 %v1207_v48, %v1160_v49 }
 0x462   :  { %v2349_v53 = vpop.f32.mrf.mxu1 }
 0x463   :  { %v1209_v56 = vadd.f32 %v2345_v25, %v1208_v52 }
 0x464   :  { %v1173_v57 = vpop.f32.mrf.mxu1 }
 0x465   :  { %v1210_v59 = vadd.f32 %v2346_v42, %v1209_v56 }
 0x466   :  { %v2350_v60 = vpop.f32.mrf.mxu1 }
 0x467   :  { %v1211_v61 = vadd.f32 %v1210_v59, %v1173_v57 }
 0x468   :  { %v1176_v38 = vpop.f32.mrf.mxu1 }
 0x469   :  { %v1212_v63 = vadd.f32 %v1211_v61, %v1176_v38 }
 0x46a   :  { %v2353_v39 = vpop.f32.mrf.mxu1 }
 0x46b   :  { %v1213_v0 = vadd.f32 %v2349_v53, %v1212_v63 }
 0x46c   :  { %v1189_v40 = vpop.f32.mrf.mxu1 }
 0x46d   :  { %v1214_v1 = vadd.f32 %v2350_v60, %v1213_v0 }
 0x46e   :  { %v2354_v43 = vpop.f32.mrf.mxu1 }
 0x46f   :  { %v1215_v4 = vadd.f32 %v1214_v1, %v1189_v40 }
 0x470   :  { %v1192_v44 = vpop.f32.mrf.mxu1 }
 0x471   :  { %v1216_v47 = vadd.f32 %v1215_v4, %v1192_v44 }
 0x473   :  { %v1217_v50 = vadd.f32 %v2353_v39, %v1216_v47 }
 0x475   :  { %v1218_v54 = vadd.f32 %v2354_v43, %v1217_v50 }
 0x477   :  { %v1219_v2 = vrot.slane %v1218_v54, 4 }
 0x479   :  { %v1220_v51 = vadd.f32 %v1219_v2, %v1218_v54 }
 0x47b   :  { %v1221_v55 = vrot.slane %v1220_v51, 2 }
 0x47d   :  { %v1222_v58 = vadd.f32 %v1221_v55, %v1220_v51 }
 0x47f   :  { %v1223_v62 = vrot.slane %v1222_v58, 1 }
 0x481   :  { %v1224_v3 = vadd.f32 %v1223_v62, %v1222_v58 }
 0x483   :  { %v1225_v5 = vmul.f32 0.015625, %v1224_v3 }
 0x485   :  { %v2672_v6 = vsub.f32 %v1141_v31, %v1225_v5  ;;  %v2674_v8 = vsub.f32 %v1144_v33, %v1225_v5  ;;  %v2676_v9 = vsub.f32 %v2341_v29, %v1225_v5  ;;  %v2682_v11 = vsub.f32 %v2342_v21, %v1225_v5 }
 0x486   :  { %v2684_v12 = vsub.f32 %v1157_v37, %v1225_v5  ;;  %v1231_v15 = vsub.f32 %v1160_v49, %v1225_v5  ;;  %v1232_v17 = vsub.f32 %v2345_v25, %v1225_v5  ;;  %v1234_v19 = vsub.f32 %v1173_v57, %v1225_v5 }
 0x487   :  { %v1258_v10 = vmul.f32 %v2672_v6, %v2672_v6  ;;  %v1259_v7 = vmul.f32 %v2674_v8, %v2674_v8  ;;  %v1260_v14 = vmul.f32 %v2676_v9, %v2676_v9  ;;  %v1261_v16 = vmul.f32 %v2682_v11, %v2682_v11 }
 0x488   :  { %v1262_v20 = vmul.f32 %v2684_v12, %v2684_v12  ;;  %v1233_v23 = vsub.f32 %v2346_v42, %v1225_v5  ;;  %v1235_v24 = vsub.f32 %v1176_v38, %v1225_v5  ;;  %v1263_v26 = vmul.f32 %v1231_v15, %v1231_v15 }
 0x489   :  { %v1274_v13 = vadd.f32 %v1259_v7, %v1258_v10  ;;  %v1236_v27 = vsub.f32 %v2349_v53, %v1225_v5  ;;  %v1250_v29 = vmul.f32 0.0, %v1234_v19  ;;  %v1264_v30 = vmul.f32 %v1232_v17, %v1232_v17 }
 0x48a   :  { %v1237_v21 = vsub.f32 %v2350_v60, %v1225_v5  ;;  %v1251_v32 = vmul.f32 0.0, %v1235_v24  ;;  %v1265_v33 = vmul.f32 %v1233_v23, %v1233_v23  ;;  %v1238_v35 = vsub.f32 %v1189_v40, %v1225_v5 }
 0x48b   :  { %v1275_v18 = vadd.f32 %v1274_v13, %v1260_v14  ;;  %v1252_v36 = vmul.f32 0.0, %v1236_v27  ;;  %v1266_v25 = vmul.f32 %v1250_v29, %v1250_v29  ;;  %v1239_v41 = vsub.f32 %v1192_v44, %v1225_v5 }
 0x48c   :  { %v1253_v45 = vmul.f32 0.0, %v1237_v21  ;;  %v1267_v46 = vmul.f32 %v1251_v32, %v1251_v32  ;;  %v1240_v42 = vsub.f32 %v2353_v39, %v1225_v5  ;;  %v1254_v49 = vmul.f32 0.0, %v1238_v35 }
 0x48d   :  { %v1276_v22 = vadd.f32 %v1275_v18, %v1261_v16  ;;  %v1268_v52 = vmul.f32 %v1252_v36, %v1252_v36  ;;  %v1241_v53 = vsub.f32 %v2354_v43, %v1225_v5  ;;  %v1255_v57 = vmul.f32 0.0, %v1239_v41 }
 0x48e   :  { %v1269_v59 = vmul.f32 %v1253_v45, %v1253_v45  ;;  %v1256_v60 = vmul.f32 0.0, %v1240_v42  ;;  %v1270_v38 = vmul.f32 %v1254_v49, %v1254_v49 }
 0x48f   :  { %v1277_v28 = vadd.f32 %v1276_v22, %v1262_v20  ;;  %v1257_v0 = vmul.f32 0.0, %v1241_v53  ;;  %v1271_v40 = vmul.f32 %v1255_v57, %v1255_v57 }
 0x490   :  { %v1272_v4 = vmul.f32 %v1256_v60, %v1256_v60 }
 0x491   :  { %v1278_v31 = vadd.f32 %v1277_v28, %v1263_v26  ;;  %v1273_v44 = vmul.f32 %v1257_v0, %v1257_v0  ;;  %v1961_v26 = vld [vmem:[%s2713_s4 + $0x1] ss:$0 sm:$0xff] }
 0x493   :  { %v1279_v34 = vadd.f32 %v1278_v31, %v1264_v30 }
 0x495   :  { %v1280_v37 = vadd.f32 %v1279_v34, %v1265_v33 }
 0x497   :  { %v1281_v48 = vadd.f32 %v1280_v37, %v1266_v25  ;;  %v1963_v25 = vld [vmem:[%s2714_s5 + $0x1] ss:$0 sm:$0xff] }
 0x499   :  { %v1282_v56 = vadd.f32 %v1281_v48, %v1267_v46 }
 0x49b   :  { %v1283_v61 = vadd.f32 %v1282_v56, %v1268_v52 }
 0x49d   :  { %v1284_v63 = vadd.f32 %v1283_v61, %v1269_v59 }
 0x49f   :  { %v1285_v1 = vadd.f32 %v1284_v63, %v1270_v38 }
 0x4a1   :  { %v1286_v47 = vadd.f32 %v1285_v1, %v1271_v40 }
 0x4a3   :  { %v1287_v50 = vadd.f32 %v1286_v47, %v1272_v4 }
 0x4a5   :  { %v1288_v54 = vadd.f32 %v1287_v50, %v1273_v44 }
 0x4a7   :  { %v1289_v2 = vrot.slane %v1288_v54, 4 }
 0x4a9   :  { %v1290_v39 = vadd.f32 %v1289_v2, %v1288_v54 }
 0x4ab   :  { %v1291_v51 = vrot.slane %v1290_v39, 2 }
 0x4ad   :  { %v1292_v55 = vadd.f32 %v1291_v51, %v1290_v39 }
 0x4af   :  { %v1293_v58 = vrot.slane %v1292_v55, 1 }
 0x4b1   :  { %v1294_v43 = vadd.f32 %v1293_v58, %v1292_v55 }
 0x4b3   :  { %v1295_v62 = vmul.f32 0.015625, %v1294_v43 }
 0x4b5   :  { %v1296_v3 = vadd.f32 1e-05, %v1295_v62 }
 0x4b7   :  { %2501 = vrsqrt.f32 %v1296_v3 }
 0x4c4   :  { %v2502_v5 = vpop.eup %2501 }
 0x4c5   :  { %v1298_v10 = vmul.f32 %v2502_v5, %v2672_v6  ;;  %v1299_v7 = vmul.f32 %v2502_v5, %v2674_v8  ;;  %v1300_v14 = vmul.f32 %v2502_v5, %v2676_v9  ;;  %v1301_v13 = vmul.f32 %v2502_v5, %v2682_v11 }
 0x4c6   :  { %v1302_v16 = vmul.f32 %v2502_v5, %v2684_v12  ;;  %v1303_v18 = vmul.f32 %v2502_v5, %v1231_v15  ;;  %v1304_v20 = vmul.f32 %v2502_v5, %v1232_v17  ;;  %v1305_v22 = vmul.f32 %v2502_v5, %v1233_v23 }
 0x4c7   :  { %v1306_v28 = vmul.f32 %v2502_v5, %v1234_v19  ;;  %v1307_v29 = vmul.f32 %v2502_v5, %v1235_v24  ;;  %v1308_v30 = vmul.f32 %v2502_v5, %v1236_v27  ;;  %v1309_v31 = vmul.f32 %v2502_v5, %v1237_v21 }
 0x4c8   :  { %v1310_v6 = vmul.f32 %v2502_v5, %v1238_v35  ;;  %v1311_v32 = vmul.f32 %v2502_v5, %v1239_v41  ;;  %v1312_v8 = vmul.f32 %v2502_v5, %v1240_v42  ;;  %v1313_v33 = vmul.f32 %v2502_v5, %v1241_v53 }
 0x4c9   :  { %v1322_v9 = vmul.f32 %v1961_v26, %v1298_v10  ;;  %v1323_v34 = vmul.f32 %v1961_v26, %v1299_v7  ;;  %v1324_v11 = vmul.f32 %v1961_v26, %v1300_v14  ;;  %v1325_v36 = vmul.f32 %v1961_v26, %v1301_v13 }
 0x4ca   :  { %v1326_v12 = vmul.f32 %v1961_v26, %v1302_v16  ;;  %v1327_v15 = vmul.f32 %v1961_v26, %v1303_v18  ;;  %v1328_v17 = vmul.f32 %v1961_v26, %v1304_v20  ;;  %v1329_v23 = vmul.f32 %v1961_v26, %v1305_v22 }
 0x4cb   :  { %v1330_v19 = vmul.f32 %v1961_v26, %v1306_v28  ;;  %v1331_v24 = vmul.f32 %v1961_v26, %v1307_v29  ;;  %v1332_v27 = vmul.f32 %v1961_v26, %v1308_v30  ;;  %v1333_v21 = vmul.f32 %v1961_v26, %v1309_v31 }
 0x4cc   :  { %v1334_v35 = vmul.f32 %v1961_v26, %v1310_v6  ;;  %v1335_v37 = vmul.f32 %v1961_v26, %v1311_v32  ;;  %v1336_v41 = vmul.f32 %v1961_v26, %v1312_v8  ;;  %v1337_v45 = vmul.f32 %v1961_v26, %v1313_v33 }
 0x4cd   :  { %v1346_v46 = vadd.f32 %v1963_v25, %v1322_v9  ;;  %v1347_v48 = vadd.f32 %v1963_v25, %v1323_v34  ;;  %v1348_v42 = vadd.f32 %v1963_v25, %v1324_v11  ;;  %v1349_v49 = vadd.f32 %v1963_v25, %v1325_v36  ;;  %v2491_v34 = vld [vmem:[#allocation3] sm:$0xff]  }
 0x4ce   :  { %v1350_v52 = vadd.f32 %v1963_v25, %v1326_v12  ;;  %v1351_v56 = vadd.f32 %v1963_v25, %v1327_v15  ;;  %v1352_v53 = vadd.f32 %v1963_v25, %v1328_v17  ;;  %v1353_v57 = vadd.f32 %v1963_v25, %v1329_v23  ;;  %2403 = vmatprep.mubr.bf16.mxu1 %v2491_v34 }
 0x4cf   :  { %v1354_v59 = vadd.f32 %v1963_v25, %v1330_v19  ;;  %v1355_v61 = vadd.f32 %v1963_v25, %v1331_v24  ;;  %v1356_v60 = vadd.f32 %v1963_v25, %v1332_v27  ;;  %v1357_v38 = vadd.f32 %v1963_v25, %v1333_v21 }
 0x4d0   :  { %v1358_v63 = vadd.f32 %v1963_v25, %v1334_v35  ;;  %v1359_v0 = vadd.f32 %v1963_v25, %v1335_v37  ;;  %v1360_v40 = vadd.f32 %v1963_v25, %v1336_v41  ;;  %v1361_v1 = vadd.f32 %v1963_v25, %v1337_v45 }
 0x4d1   :  { %v1362_v4 = vmax.f32 %v1346_v46, 0.0  ;;  %v1363_v47 = vmax.f32 %v1347_v48, 0.0  ;;  %v1364_v44 = vmax.f32 %v1348_v42, 0.0  ;;  %v1365_v50 = vmax.f32 %v1349_v49, 0.0 }
 0x4d2   :  { %v1366_v54 = vmax.f32 %v1350_v52, 0.0  ;;  %v1367_v2 = vmax.f32 %v1351_v56, 0.0  ;;  %v1368_v39 = vmax.f32 %v1352_v53, 0.0  ;;  %v1369_v51 = vmax.f32 %v1353_v57, 0.0 }
 0x4d3   :  { %v1370_v55 = vmax.f32 %v1354_v59, 0.0  ;;  %v1371_v58 = vmax.f32 %v1355_v61, 0.0  ;;  %v1372_v43 = vmax.f32 %v1356_v60, 0.0  ;;  %v1373_v62 = vmax.f32 %v1357_v38, 0.0  ;;  %v2492_v61 = vld [vmem:[#allocation3 + $0x8] sm:$0xff]   ;;  %v2493_v60 = vld [vmem:[#allocation3 + $0x10] sm:$0xff]  }
 0x4d4   :  { %v1374_v3 = vmax.f32 %v1358_v63, 0.0  ;;  %v1375_v5 = vmax.f32 %v1359_v0, 0.0  ;;  %v1376_v10 = vmax.f32 %v1360_v40, 0.0  ;;  %v1377_v7 = vmax.f32 %v1361_v1, 0.0  ;;  %v2494_v38 = vld [vmem:[#allocation3 + $0x18] sm:$0xff]   ;;  %v2495_v63 = vld [vmem:[#allocation3 + $0x20] sm:$0xff]  }
 0x4d5   :  { %v2080_v14 = vpack.c.bf16 %v1363_v47, %v1362_v4  ;;  %v2085_v13 = vpack.c.bf16 %v1365_v50, %v1364_v44  ;;  %v2090_v16 = vpack.c.bf16 %v1367_v2, %v1366_v54  ;;  %v2095_v18 = vpack.c.bf16 %v1369_v51, %v1368_v39  ;;  %v2496_v0 = vld [vmem:[#allocation3 + $0x28] sm:$0xff]   ;;  %v2497_v40 = vld [vmem:[#allocation3 + $0x30] sm:$0xff]   ;;  %v2498_v1 = vld [vmem:[#allocation3 + $0x38] sm:$0xff]  }
 0x4d6   :  { %v2100_v20 = vpack.c.bf16 %v1371_v58, %v1370_v55  ;;  %v2105_v22 = vpack.c.bf16 %v1373_v62, %v1372_v43  ;;  %v2110_v26 = vpack.c.bf16 %v1375_v5, %v1374_v3  ;;  %v2115_v28 = vpack.c.bf16 %v1377_v7, %v1376_v10  ;;  %v1996_v4 = vld [vmem:[%s2712_s3] ss:$0 sm:$0xff]  ;;  %s2594_s3 = smov [#allocation9]  }
 0x4d7   :  { %2081 = vst [vmem:[#allocation2] sm:$0xff] %v2080_v14   ;;  %2124 = vst [vmem:[#allocation2 + $0x8] sm:$0xff] %v2085_v13   ;;  %s1881_s19 = sshll.u32 %s2594_s3, 4  ;;  %s1882_s19 = int_to_ptr.vmem [resolvable:$true] %s1881_s19 }
 0x4d8   :  { %2125 = vst [vmem:[#allocation2 + $0x10] sm:$0xff] %v2090_v16   ;;  %2126 = vst [vmem:[#allocation2 + $0x18] sm:$0xff] %v2095_v18   ;;  %s2563_s20 = scalar_lea.vmem %s1882_s19, 2048  ;;  %p2568_p2 = scmp.lt.s32.totalorder %s1882_s19, %s1882_s19 }
 0x4d9   :  { %2129 = vst [vmem:[#allocation2 + $0x30] sm:$0xff] %v2110_v26   ;;  %2127 = vst [vmem:[#allocation2 + $0x20] sm:$0xff] %v2100_v20   ;;  %p2564_p1 = scmp.ne.s32.totalorder %s1882_s19, %s2563_s20  ;;  %p2569_p3 = scmp.lt.s32.totalorder %s2563_s20, %s2563_s20 }
 0x4da   :  { %2128 = vst [vmem:[#allocation2 + $0x28] sm:$0xff] %v2105_v22   ;;  %2130 = vst [vmem:[#allocation2 + $0x38] sm:$0xff] %v2115_v28  }
 0x4db   :  { %p2570_p4 = por %p2569_p3, %p2568_p2 }
 0x4dd   :  { %p2571_p5 = pnand %p2570_p4, %p2564_p1 }
 0x4de   :  { %v2483_v29 = vld [vmem:[#allocation2] sm:$0xff]   ;;  %v2484_v30 = vld [vmem:[#allocation2 + $0x8] sm:$0xff]  }
 0x4df   :  { %2371 = vmatprep.mubr.bf16.mxu0 %v2483_v29  ;;  %v2485_v31 = vld [vmem:[#allocation2 + $0x10] sm:$0xff]   ;;  %v2486_v6 = vld [vmem:[#allocation2 + $0x18] sm:$0xff]  }
 0x4e0   :  { %2372 = vmatmul.mubr.bf16.vlgmr.msra.gmra.mxu0 %v2484_v30  ;;  %v2487_v32 = vld [vmem:[#allocation2 + $0x20] sm:$0xff]   ;;  %v2489_v33 = vld [vmem:[#allocation2 + $0x30] sm:$0xff]  }
 0x4e1   :  { %2375 = vmatprep.mubr.bf16.mxu0 %v2485_v31  ;;  %v2488_v8 = vld [vmem:[#allocation2 + $0x28] sm:$0xff]   ;;  %v2490_v9 = vld [vmem:[#allocation2 + $0x38] sm:$0xff]  }
 0x4e8   :  { %2376 = vmatmul.mubr.bf16.gmra.mxu0 %v2486_v6 }
 0x4e9   :  { %2379 = vmatprep.mubr.bf16.mxu0 %v2487_v32 }
 0x4f0   :  { %2380 = vmatmul.mubr.bf16.gmra.mxu0 %v2488_v8 }
 0x4f1   :  { %2383 = vmatprep.mubr.bf16.mxu0 %v2489_v33 }
 0x4f8   :  { %2384 = vmatmul.mubr.bf16.gmra.mxu0 %v2490_v9 }
 0x5a0   :  { %v2373_v11 = vpop.f32.mrf.mxu0 }
 0x5a2   :  { %v1621_v36 = vpop.f32.mrf.mxu0 }
 0x5a4   :  { %v2374_v12 = vpop.f32.mrf.mxu0 }
 0x5a5   :  { %v1701_v57 = vpack.c.bf16 %v2374_v12, %v2373_v11 }
 0x5a6   :  { %v1624_v15 = vpop.f32.mrf.mxu0 }
 0x5a7   :  { %v1700_v59 = vpack.c.bf16 %v1624_v15, %v1621_v36 }
 0x5a8   :  { %v2377_v17 = vpop.f32.mrf.mxu0 }
 0x5aa   :  { %v1637_v23 = vpop.f32.mrf.mxu0 }
 0x5ac   :  { %v2378_v25 = vpop.f32.mrf.mxu0 }
 0x5ad   :  { %v1703_v56 = vpack.c.bf16 %v2378_v25, %v2377_v17 }
 0x5ae   :  { %v1640_v19 = vpop.f32.mrf.mxu0 }
 0x5af   :  { %v1702_v53 = vpack.c.bf16 %v1640_v19, %v1637_v23 }
 0x5b0   :  { %v2381_v24 = vpop.f32.mrf.mxu0 }
 0x5b2   :  { %v1653_v27 = vpop.f32.mrf.mxu0 }
 0x5b4   :  { %v2382_v21 = vpop.f32.mrf.mxu0 }
 0x5b5   :  { %v1705_v49 = vpack.c.bf16 %v2382_v21, %v2381_v24 }
 0x5b6   :  { %v1656_v35 = vpop.f32.mrf.mxu0 }
 0x5b7   :  { %v1704_v52 = vpack.c.bf16 %v1656_v35, %v1653_v27 }
 0x5b8   :  { %v2385_v37 = vpop.f32.mrf.mxu0 }
 0x5ba   :  { %v1669_v41 = vpop.f32.mrf.mxu0 }
 0x5bc   :  { %v2386_v45 = vpop.f32.mrf.mxu0 }
 0x5bd   :  { %v1707_v46 = vpack.c.bf16 %v2386_v45, %v2385_v37 }
 0x5be   :  { %v1672_v48 = vpop.f32.mrf.mxu0 }
 0x5bf   :  { %v1706_v42 = vpack.c.bf16 %v1672_v48, %v1669_v41  ;;  %2387 = vmatprep.subr.bf16.mxu1 %v1707_v46 }
 0x5c0   :  { %2388 = vmatpush3.bf16.msra.mxu1 %v1707_v46 }
 0x5c1   :  { %2389 = vmatprep.subr.bf16.mxu1 %v1706_v42 }
 0x5c4   :  { %2390 = vmatpush3.bf16.msra.mxu1 %v1706_v42 }
 0x5c5   :  { %2391 = vmatprep.subr.bf16.mxu1 %v1705_v49 }
 0x5c8   :  { %2392 = vmatpush3.bf16.msra.mxu1 %v1705_v49 }
 0x5c9   :  { %2393 = vmatprep.subr.bf16.mxu1 %v1704_v52 }
 0x5cc   :  { %2394 = vmatpush3.bf16.msra.mxu1 %v1704_v52 }
 0x5cd   :  { %2395 = vmatprep.subr.bf16.mxu1 %v1703_v56 }
 0x5d0   :  { %2396 = vmatpush3.bf16.msra.mxu1 %v1703_v56 }
 0x5d1   :  { %2397 = vmatprep.subr.bf16.mxu1 %v1702_v53 }
 0x5d4   :  { %2398 = vmatpush3.bf16.msra.mxu1 %v1702_v53 }
 0x5d5   :  { %2399 = vmatprep.subr.bf16.mxu1 %v1701_v57 }
 0x5d8   :  { %2400 = vmatpush3.bf16.msra.mxu1 %v1701_v57 }
 0x5d9   :  { %2401 = vmatprep.subr.bf16.mxu1 %v1700_v59 }
 0x5dc   :  { %2402 = vmatpush3.bf16.msra.mxu1 %v1700_v59 }
 0x5df   :  { %2404 = vmatmul.mubr.bf16.vlgmr.msra.gmra.mxu1 %v2492_v61 }
 0x5e0   :  { %2407 = vmatprep.mubr.bf16.mxu1 %v2493_v60 }
 0x5e7   :  { %2408 = vmatmul.mubr.bf16.gmra.mxu1 %v2494_v38 }
 0x5e8   :  { %2411 = vmatprep.mubr.bf16.mxu1 %v2495_v63 }
 0x5ef   :  { %2412 = vmatmul.mubr.bf16.gmra.mxu1 %v2496_v0 }
 0x5f0   :  { %2415 = vmatprep.mubr.bf16.mxu1 %v2497_v40 }
 0x5f7   :  { %2416 = vmatmul.mubr.bf16.gmra.mxu1 %v2498_v1 }
 0x69f   :  { %v2405_v47 = vpop.f32.mrf.mxu1 }
 0x6a0   :  { %v1806_v44 = vadd.f32 %v2405_v47, %v1996_v4 }
 0x6a1   :  { %v1797_v50 = vpop.f32.mrf.mxu1 }
 0x6a2   :  { %1862 = vst [vmem:[#allocation9 + $0x10] sm:$0xff] %v1806_v44  ;;  %v1798_v54 = vadd.f32 %v1996_v4, %v1797_v50 }
 0x6a3   :  { %v2406_v2 = vpop.f32.mrf.mxu1 }
 0x6a4   :  { %1860 = vst [vmem:[#allocation9] sm:$0xff] %v1798_v54  ;;  %v1809_v39 = vadd.f32 %v2406_v2, %v1996_v4 }
 0x6a5   :  { %v1800_v51 = vpop.f32.mrf.mxu1 }
 0x6a6   :  { %1863 = vst [vmem:[#allocation9 + $0x18] sm:$0xff] %v1809_v39  ;;  %v1801_v55 = vadd.f32 %v1996_v4, %v1800_v51 }
 0x6a7   :  { %v2409_v58 = vpop.f32.mrf.mxu1 }
 0x6a8   :  { %1861 = vst [vmem:[#allocation9 + $0x8] sm:$0xff] %v1801_v55  ;;  %v1822_v43 = vadd.f32 %v2409_v58, %v1996_v4 }
 0x6a9   :  { %v1813_v62 = vpop.f32.mrf.mxu1 }
 0x6aa   :  { %1866 = vst [vmem:[#allocation9 + $0x30] sm:$0xff] %v1822_v43  ;;  %v1814_v3 = vadd.f32 %v1996_v4, %v1813_v62 }
 0x6ab   :  { %v2410_v5 = vpop.f32.mrf.mxu1 }
 0x6ac   :  { %1864 = vst [vmem:[#allocation9 + $0x20] sm:$0xff] %v1814_v3  ;;  %v1825_v10 = vadd.f32 %v2410_v5, %v1996_v4 }
 0x6ad   :  { %v1816_v7 = vpop.f32.mrf.mxu1 }
 0x6ae   :  { %1867 = vst [vmem:[#allocation9 + $0x38] sm:$0xff] %v1825_v10  ;;  %v1817_v14 = vadd.f32 %v1996_v4, %v1816_v7 }
 0x6af   :  { %v2413_v13 = vpop.f32.mrf.mxu1 }
 0x6b0   :  { %1865 = vst [vmem:[#allocation9 + $0x28] sm:$0xff] %v1817_v14  ;;  %v1838_v16 = vadd.f32 %v2413_v13, %v1996_v4 }
 0x6b1   :  { %v1829_v18 = vpop.f32.mrf.mxu1 }
 0x6b2   :  { %1870 = vst [vmem:[#allocation9 + $0x50] sm:$0xff] %v1838_v16  ;;  %v1830_v20 = vadd.f32 %v1996_v4, %v1829_v18 }
 0x6b3   :  { %v2414_v22 = vpop.f32.mrf.mxu1 }
 0x6b4   :  { %1868 = vst [vmem:[#allocation9 + $0x40] sm:$0xff] %v1830_v20  ;;  %v1841_v26 = vadd.f32 %v2414_v22, %v1996_v4 }
 0x6b5   :  { %v1832_v28 = vpop.f32.mrf.mxu1 }
 0x6b6   :  { %1871 = vst [vmem:[#allocation9 + $0x58] sm:$0xff] %v1841_v26  ;;  %v1833_v29 = vadd.f32 %v1996_v4, %v1832_v28 }
 0x6b7   :  { %v2417_v30 = vpop.f32.mrf.mxu1 }
 0x6b8   :  { %1869 = vst [vmem:[#allocation9 + $0x48] sm:$0xff] %v1833_v29  ;;  %v1854_v31 = vadd.f32 %v2417_v30, %v1996_v4 }
 0x6b9   :  { %v1845_v6 = vpop.f32.mrf.mxu1 }
 0x6ba   :  { %1874 = vst [vmem:[#allocation9 + $0x70] sm:$0xff] %v1854_v31  ;;  %v1846_v32 = vadd.f32 %v1996_v4, %v1845_v6 }
 0x6bb   :  { %v2418_v8 = vpop.f32.mrf.mxu1 }
 0x6bc   :  { %1872 = vst [vmem:[#allocation9 + $0x60] sm:$0xff] %v1846_v32  ;;  %v1857_v33 = vadd.f32 %v2418_v8, %v1996_v4 }
 0x6bd   :  { %v1848_v9 = vpop.f32.mrf.mxu1 }
 0x6be   :  { %1875 = vst [vmem:[#allocation9 + $0x78] sm:$0xff] %v1857_v33  ;;  %v1849_v34 = vadd.f32 %v1996_v4, %v1848_v9 }
 0x6c0   :  { %1873 = vst [vmem:[#allocation9 + $0x68] sm:$0xff] %v1849_v34 }
 0x6c1   :  { %2574 = shalt.err (!%p2571_p5)
}
 0x6c2   :  { %s2595_s21 = smov 128   ;;  %s2596_s22 = smov 8  }
 0x6c3   :  { %1887 = dma.vmem_to_hbm [thread:$0]  %s1882_s19, 2048, %s2715_s6, [#allocation5], %s2595_s21, %s2595_s21, %s2596_s22  }
 0x6c4   :  { %2587 = dma.done.wait [#allocation5], 2048  }
 0x6c5   :  { %2588 = vsyncadd [#allocation5], 4294965248 }
 0x6c6   :  { %1891 = vsyncpa [#allocation4], 1 }
 0x6c7   :  { %1892 = vsyncpa [#allocation7], 1 }
 0x6c8   :  { %1893 = vsyncpa [#allocation5], 1 }

// kernel: tpu_custom_call.1
= control target key start
LH: loop header
LB: loop body
LE: loop exit
PB: predicated region body
PF: predicated region fallthrough
CT: control target
= control target key end

     0   :  { %11 = vsyncpa [#allocation4], 0  ;;  %s2709_s0 = inlined_call_operand.hbm [shape: bf16[128,128], index: 0, kind: input, shape index: {}]   ;;  %s2710_s1 = inlined_call_operand.hbm [shape: bf16[128,128], index: 1, kind: input, shape index: {}]   ;;  %s2711_s2 = inlined_call_operand.hbm [shape: bf16[3,128,128], index: 2, kind: input, shape index: {}]   ;;  %s2712_s3 = inlined_call_operand.vmem [shape: f32[1,128], index: 3, kind: input, shape index: {}]   ;;  %s2713_s4 = inlined_call_operand.vmem [shape: f32[2,1,128], index: 4, kind: input, shape index: {}]   ;;  %s2714_s5 = inlined_call_operand.vmem [shape: f32[2,1,128], index: 5, kind: input, shape index: {}]   ;;  %s2715_s6 = inlined_call_operand.hbm [shape: f32[128,128], index: 6, kind: output, shape index: {}]  }
   0x1   :  { %12 = vsyncpa [#allocation7], 0 }
   0x2   :  { %13 = vsyncpa [#allocation5], 0  ;;  %s2589_s21 = smov [#allocation6]   ;;  %s2590_s23 = smov [#allocation3]  }
   0x3   :  { %s31_s22 = sshll.u32 %s2589_s21, 4  ;;  %s19_s24 = sshll.u32 %s2590_s23, 4  ;;  %s32_s22 = int_to_ptr.vmem [resolvable:$true] %s31_s22  ;;  %s20_s24 = int_to_ptr.vmem [resolvable:$true] %s19_s24 }
   0x4   :  { %s2511_s25 = scalar_lea.vmem %s32_s22, 1024  ;;  %p2516_p1 = scmp.lt.s32.totalorder %s32_s22, %s32_s22 }
   0x5   :  { %p2512_p0 = scmp.ne.s32.totalorder %s32_s22, %s2511_s25  ;;  %p2517_p2 = scmp.lt.s32.totalorder %s2511_s25, %s2511_s25 }
   0x7   :  { %p2518_p3 = por %p2517_p2, %p2516_p1 }
   0x9   :  { %p2519_p4 = pnand %p2518_p3, %p2512_p0 }
   0xb   :  { %2522 = shalt.err (!%p2519_p4)
}
   0xc   :  { %s2591_s26 = smov 64   ;;  %s2592_s27 = smov 4  }
   0xd   :  { %37 = dma.hbm_to_vmem [thread:$0]  %s2710_s1, 1024, %s32_s22, [#allocation7], %s2591_s26, %s2591_s26, %s2592_s27  }
   0xe   :  { %s2531_s30 = scalar_lea.vmem %s20_s24, 1024  ;;  %p2536_p6 = scmp.lt.s32.totalorder %s20_s24, %s20_s24 }
   0xf   :  { %p2532_p5 = scmp.ne.s32.totalorder %s20_s24, %s2531_s30  ;;  %p2537_p7 = scmp.lt.s32.totalorder %s2531_s30, %s2531_s30 }
  0x11   :  { %p2538_p8 = por %p2537_p7, %p2536_p6 }
  0x13   :  { %p2539_p9 = pnand %p2538_p8, %p2532_p5 }
  0x15   :  { %2542 = shalt.err (!%p2539_p9)
}
  0x16   :  { %25 = dma.hbm_to_vmem [thread:$0]  %s2709_s0, 1024, %s20_s24, [#allocation4], %s2591_s26, %s2591_s26, %s2592_s27  }
  0x17   :  { %s2593_s9 = smov [#allocation8]  }
  0x18   :  { %s43_s10 = sshll.u32 %s2593_s9, 4  ;;  %s44_s10 = int_to_ptr.vmem [resolvable:$true] %s43_s10 }
  0x19   :  { %s2551_s11 = scalar_lea.vmem %s44_s10, 3072  ;;  %p2556_p11 = scmp.lt.s32.totalorder %s44_s10, %s44_s10 }
  0x1a   :  { %p2552_p10 = scmp.ne.s32.totalorder %s44_s10, %s2551_s11  ;;  %p2557_p12 = scmp.lt.s32.totalorder %s2551_s11, %s2551_s11 }
  0x1c   :  { %p2558_p13 = por %p2557_p12, %p2556_p11 }
  0x1e   :  { %p2559_p0 = pnand %p2558_p13, %p2552_p10 }
  0x20   :  { %2562 = shalt.err (!%p2559_p0)
}
  0x21   :  { %49 = dma.hbm_to_vmem [thread:$0]  %s2711_s2, 3072, %s44_s10, [#allocation7], %s2591_s26, %s2591_s26, %s2592_s27  }
  0x22   :  { %2583 = dma.done.wait [#allocation4], 1024  }
  0x23   :  { %2584 = vsyncadd [#allocation4], 4294966272 }
  0x24   :  { %2585 = dma.done.wait [#allocation7], 4096  }
  0x25   :  { %2586 = vsyncadd [#allocation7], 4294963200  ;;  %v2427_v0 = vld [vmem:[#allocation8 + $0x38] sm:$0xff]   ;;  %v2428_v1 = vld [vmem:[#allocation8 + $0x30] sm:$0xff]  }
  0x26   :  { %2227 = vmatprep.subr.bf16.mxu0 %v2427_v0  ;;  %v2429_v2 = vld [vmem:[#allocation8 + $0x28] sm:$0xff]   ;;  %v2430_v3 = vld [vmem:[#allocation8 + $0x20] sm:$0xff]   ;;  %v135_v6 = vld [vmem:[#allocation6 + $0x10] sm:$0xff]  }
  0x27   :  { %2228 = vmatpush3.bf16.msra.mxu0 %v2427_v0  ;;  %v131_v4 = vld [vmem:[#allocation6] sm:$0xff]   ;;  %v133_v5 = vld [vmem:[#allocation6 + $0x8] sm:$0xff]   ;;  %151 = vst [vmem:[#allocation2 + $0x10] sm:$0xff] %v135_v6   ;;  %v137_v7 = vld [vmem:[#allocation6 + $0x18] sm:$0xff]  }
  0x28   :  { %2229 = vmatprep.subr.bf16.mxu0 %v2428_v1  ;;  %147 = vst [vmem:[#allocation2] sm:$0xff] %v131_v4   ;;  %149 = vst [vmem:[#allocation2 + $0x8] sm:$0xff] %v133_v5   ;;  %v139_v8 = vld [vmem:[#allocation6 + $0x20] sm:$0xff]   ;;  %v141_v9 = vld [vmem:[#allocation6 + $0x28] sm:$0xff]  }
  0x29   :  { %v2431_v10 = vld [vmem:[#allocation8 + $0x18] sm:$0xff]   ;;  %153 = vst [vmem:[#allocation2 + $0x18] sm:$0xff] %v137_v7   ;;  %155 = vst [vmem:[#allocation2 + $0x20] sm:$0xff] %v139_v8   ;;  %v143_v11 = vld [vmem:[#allocation6 + $0x30] sm:$0xff]  }
  0x2a   :  { %157 = vst [vmem:[#allocation2 + $0x28] sm:$0xff] %v141_v9   ;;  %v145_v12 = vld [vmem:[#allocation6 + $0x38] sm:$0xff]   ;;  %159 = vst [vmem:[#allocation2 + $0x30] sm:$0xff] %v143_v11   ;;  %v2432_v13 = vld [vmem:[#allocation8 + $0x10] sm:$0xff]  }
  0x2b   :  { %2230 = vmatpush3.bf16.msra.mxu0 %v2428_v1  ;;  %161 = vst [vmem:[#allocation2 + $0x38] sm:$0xff] %v145_v12   ;;  %v2433_v15 = vld [vmem:[#allocation8 + $0x8] sm:$0xff]   ;;  %v2434_v16 = vld [vmem:[#allocation8] sm:$0xff]   ;;  %v2445_v50 = vld [vmem:[#allocation3 + $0x10] sm:$0xff]  }
  0x2c   :  { %2231 = vmatprep.subr.bf16.mxu0 %v2429_v2  ;;  %v2443_v24 = vld [vmem:[#allocation3] sm:$0xff]   ;;  %v2444_v49 = vld [vmem:[#allocation3 + $0x8] sm:$0xff]   ;;  %v2446_v51 = vld [vmem:[#allocation3 + $0x18] sm:$0xff]  }
  0x2d   :  { %2275 = vmatprep.mubr.bf16.mxu1 %v2443_v24  ;;  %v2447_v52 = vld [vmem:[#allocation3 + $0x20] sm:$0xff]   ;;  %v2448_v53 = vld [vmem:[#allocation3 + $0x28] sm:$0xff]   ;;  %v2449_v54 = vld [vmem:[#allocation3 + $0x30] sm:$0xff]  }
  0x2e   :  { %v2437_v18 = vld [vmem:[#allocation2 + $0x10] sm:$0xff]   ;;  %v2450_v55 = vld [vmem:[#allocation3 + $0x38] sm:$0xff]   ;;  %v2453_v58 = vld [vmem:[#allocation8 + $0x68] sm:$0xff]  }
  0x2f   :  { %2232 = vmatpush3.bf16.msra.mxu0 %v2429_v2  ;;  %v2435_v14 = vld [vmem:[#allocation2] sm:$0xff]   ;;  %v2436_v17 = vld [vmem:[#allocation2 + $0x8] sm:$0xff]   ;;  %v2451_v56 = vld [vmem:[#allocation8 + $0x78] sm:$0xff]  }
  0x30   :  { %2233 = vmatprep.subr.bf16.mxu0 %v2430_v3  ;;  %2243 = vmatprep.mubr.bf16.mxu0 %v2435_v14  ;;  %v2438_v19 = vld [vmem:[#allocation2 + $0x18] sm:$0xff]   ;;  %v2439_v20 = vld [vmem:[#allocation2 + $0x20] sm:$0xff]   ;;  %v2452_v57 = vld [vmem:[#allocation8 + $0x70] sm:$0xff]  }
  0x31   :  { %v2440_v21 = vld [vmem:[#allocation2 + $0x28] sm:$0xff]   ;;  %v2441_v22 = vld [vmem:[#allocation2 + $0x30] sm:$0xff]   ;;  %v2454_v60 = vld [vmem:[#allocation8 + $0x60] sm:$0xff]  }
  0x32   :  { %v2442_v23 = vld [vmem:[#allocation2 + $0x38] sm:$0xff]   ;;  %v2457_v8 = vld [vmem:[#allocation8 + $0x48] sm:$0xff]   ;;  %v2458_v9 = vld [vmem:[#allocation8 + $0x40] sm:$0xff]  }
  0x33   :  { %2234 = vmatpush3.bf16.msra.mxu0 %v2430_v3  ;;  %v2455_v63 = vld [vmem:[#allocation8 + $0x58] sm:$0xff]   ;;  %v2456_v3 = vld [vmem:[#allocation8 + $0x50] sm:$0xff]  }
  0x34   :  { %2235 = vmatprep.subr.bf16.mxu0 %v2431_v10 }
  0x37   :  { %2236 = vmatpush3.bf16.msra.mxu0 %v2431_v10 }
  0x38   :  { %2237 = vmatprep.subr.bf16.mxu0 %v2432_v13 }
  0x3b   :  { %2238 = vmatpush3.bf16.msra.mxu0 %v2432_v13 }
  0x3c   :  { %2239 = vmatprep.subr.bf16.mxu0 %v2433_v15 }
  0x3f   :  { %2240 = vmatpush3.bf16.msra.mxu0 %v2433_v15 }
  0x40   :  { %2241 = vmatprep.subr.bf16.mxu0 %v2434_v16 }
  0x43   :  { %2242 = vmatpush3.bf16.msra.mxu0 %v2434_v16 }
  0x44   :  { %2291 = vmatprep.subr.bf16.mxu0 %v2451_v56 }
  0x46   :  { %2244 = vmatmul.mubr.bf16.vlgmr.msra.gmra.mxu0 %v2436_v17 }
  0x47   :  { %2247 = vmatprep.mubr.bf16.mxu0 %v2437_v18  ;;  %2292 = vmatpush3.bf16.msra.mxu0 %v2451_v56 }
  0x48   :  { %2293 = vmatprep.subr.bf16.mxu0 %v2452_v57 }
  0x4b   :  { %2294 = vmatpush3.bf16.msra.mxu0 %v2452_v57 }
  0x4c   :  { %2295 = vmatprep.subr.bf16.mxu0 %v2453_v58 }
  0x4e   :  { %2248 = vmatmul.mubr.bf16.gmra.mxu0 %v2438_v19 }
  0x4f   :  { %2251 = vmatprep.mubr.bf16.mxu0 %v2439_v20  ;;  %2296 = vmatpush3.bf16.msra.mxu0 %v2453_v58 }
  0x50   :  { %2297 = vmatprep.subr.bf16.mxu0 %v2454_v60 }
  0x53   :  { %2298 = vmatpush3.bf16.msra.mxu0 %v2454_v60 }
  0x54   :  { %2299 = vmatprep.subr.bf16.mxu0 %v2455_v63 }
  0x56   :  { %2252 = vmatmul.mubr.bf16.gmra.mxu0 %v2440_v21 }
  0x57   :  { %2255 = vmatprep.mubr.bf16.mxu0 %v2441_v22  ;;  %2300 = vmatpush3.bf16.msra.mxu0 %v2455_v63 }
  0x58   :  { %2301 = vmatprep.subr.bf16.mxu0 %v2456_v3 }
  0x5b   :  { %2302 = vmatpush3.bf16.msra.mxu0 %v2456_v3 }
  0x5c   :  { %2303 = vmatprep.subr.bf16.mxu0 %v2457_v8 }
  0x5e   :  { %2256 = vmatmul.mubr.bf16.gmra.mxu0 %v2442_v23 }
  0x5f   :  { %2304 = vmatpush3.bf16.msra.mxu0 %v2457_v8 }
  0x60   :  { %2305 = vmatprep.subr.bf16.mxu0 %v2458_v9 }
  0x63   :  { %2306 = vmatpush3.bf16.msra.mxu0 %v2458_v9 }
 0x106   :  { %v2245_v25 = vpop.f32.mrf.mxu0 }
 0x108   :  { %v325_v26 = vpop.f32.mrf.mxu0 }
 0x10a   :  { %v2246_v27 = vpop.f32.mrf.mxu0 }
 0x10b   :  { %v405_v47 = vpack.c.bf16 %v2246_v27, %v2245_v25 }
 0x10c   :  { %v328_v28 = vpop.f32.mrf.mxu0 }
 0x10d   :  { %v404_v48 = vpack.c.bf16 %v328_v28, %v325_v26 }
 0x10e   :  { %v2249_v29 = vpop.f32.mrf.mxu0 }
 0x110   :  { %v341_v30 = vpop.f32.mrf.mxu0 }
 0x112   :  { %v2250_v31 = vpop.f32.mrf.mxu0 }
 0x113   :  { %v407_v45 = vpack.c.bf16 %v2250_v31, %v2249_v29 }
 0x114   :  { %v344_v32 = vpop.f32.mrf.mxu0 }
 0x115   :  { %v406_v46 = vpack.c.bf16 %v344_v32, %v341_v30 }
 0x116   :  { %v2253_v33 = vpop.f32.mrf.mxu0 }
 0x118   :  { %v357_v34 = vpop.f32.mrf.mxu0 }
 0x11a   :  { %v2254_v35 = vpop.f32.mrf.mxu0 }
 0x11b   :  { %v409_v43 = vpack.c.bf16 %v2254_v35, %v2253_v33 }
 0x11c   :  { %v360_v36 = vpop.f32.mrf.mxu0 }
 0x11d   :  { %v408_v44 = vpack.c.bf16 %v360_v36, %v357_v34 }
 0x11e   :  { %v2257_v37 = vpop.f32.mrf.mxu0 }
 0x120   :  { %v373_v38 = vpop.f32.mrf.mxu0 }
 0x122   :  { %v2258_v39 = vpop.f32.mrf.mxu0 }
 0x123   :  { %v411_v40 = vpack.c.bf16 %v2258_v39, %v2257_v37 }
 0x124   :  { %v376_v41 = vpop.f32.mrf.mxu0 }
 0x125   :  { %v410_v42 = vpack.c.bf16 %v376_v41, %v373_v38  ;;  %2259 = vmatprep.subr.bf16.mxu1 %v411_v40 }
 0x126   :  { %2260 = vmatpush3.bf16.msra.mxu1 %v411_v40 }
 0x127   :  { %2261 = vmatprep.subr.bf16.mxu1 %v410_v42 }
 0x12a   :  { %2262 = vmatpush3.bf16.msra.mxu1 %v410_v42 }
 0x12b   :  { %2263 = vmatprep.subr.bf16.mxu1 %v409_v43 }
 0x12e   :  { %2264 = vmatpush3.bf16.msra.mxu1 %v409_v43 }
 0x12f   :  { %2265 = vmatprep.subr.bf16.mxu1 %v408_v44 }
 0x132   :  { %2266 = vmatpush3.bf16.msra.mxu1 %v408_v44 }
 0x133   :  { %2267 = vmatprep.subr.bf16.mxu1 %v407_v45 }
 0x136   :  { %2268 = vmatpush3.bf16.msra.mxu1 %v407_v45 }
 0x137   :  { %2269 = vmatprep.subr.bf16.mxu1 %v406_v46 }
 0x13a   :  { %2270 = vmatpush3.bf16.msra.mxu1 %v406_v46 }
 0x13b   :  { %2271 = vmatprep.subr.bf16.mxu1 %v405_v47 }
 0x13e   :  { %2272 = vmatpush3.bf16.msra.mxu1 %v405_v47 }
 0x13f   :  { %2273 = vmatprep.subr.bf16.mxu1 %v404_v48 }
 0x142   :  { %2274 = vmatpush3.bf16.msra.mxu1 %v404_v48 }
 0x145   :  { %2276 = vmatmul.mubr.bf16.vlgmr.msra.gmra.mxu1 %v2444_v49 }
 0x146   :  { %2279 = vmatprep.mubr.bf16.mxu1 %v2445_v50 }
 0x14d   :  { %2280 = vmatmul.mubr.bf16.gmra.mxu1 %v2446_v51 }
 0x14e   :  { %2283 = vmatprep.mubr.bf16.mxu1 %v2447_v52 }
 0x155   :  { %2284 = vmatmul.mubr.bf16.gmra.mxu1 %v2448_v53 }
 0x156   :  { %2287 = vmatprep.mubr.bf16.mxu1 %v2449_v54 }
 0x15d   :  { %2288 = vmatmul.mubr.bf16.gmra.mxu1 %v2450_v55 }
 0x205   :  { %v2277_v59 = vpop.f32.mrf.mxu1 }
 0x207   :  { %v494_v61 = vpop.f32.mrf.mxu1 }
 0x209   :  { %v2278_v62 = vpop.f32.mrf.mxu1 }
 0x20b   :  { %v497_v0 = vpop.f32.mrf.mxu1 }
 0x20c   :  { %v557_v1 = vadd.f32 %v497_v0, %v494_v61 }
 0x20d   :  { %v2281_v2 = vpop.f32.mrf.mxu1 }
 0x20e   :  { %v558_v4 = vadd.f32 %v2277_v59, %v557_v1 }
 0x20f   :  { %v510_v5 = vpop.f32.mrf.mxu1 }
 0x210   :  { %v559_v6 = vadd.f32 %v2278_v62, %v558_v4 }
 0x211   :  { %v2282_v7 = vpop.f32.mrf.mxu1 }
 0x212   :  { %v560_v10 = vadd.f32 %v559_v6, %v510_v5 }
 0x213   :  { %v513_v11 = vpop.f32.mrf.mxu1 }
 0x214   :  { %v561_v12 = vadd.f32 %v560_v10, %v513_v11 }
 0x215   :  { %v2285_v13 = vpop.f32.mrf.mxu1 }
 0x216   :  { %v562_v14 = vadd.f32 %v2281_v2, %v561_v12 }
 0x217   :  { %v526_v15 = vpop.f32.mrf.mxu1 }
 0x218   :  { %v563_v16 = vadd.f32 %v2282_v7, %v562_v14 }
 0x219   :  { %v2286_v17 = vpop.f32.mrf.mxu1 }
 0x21a   :  { %v564_v18 = vadd.f32 %v563_v16, %v526_v15 }
 0x21b   :  { %v529_v19 = vpop.f32.mrf.mxu1 }
 0x21c   :  { %v565_v20 = vadd.f32 %v564_v18, %v529_v19 }
 0x21d   :  { %v2289_v21 = vpop.f32.mrf.mxu1 }
 0x21e   :  { %v566_v22 = vadd.f32 %v2285_v13, %v565_v20 }
 0x21f   :  { %v542_v23 = vpop.f32.mrf.mxu1 }
 0x220   :  { %v567_v24 = vadd.f32 %v2286_v17, %v566_v22 }
 0x221   :  { %v2290_v25 = vpop.f32.mrf.mxu1 }
 0x222   :  { %v568_v26 = vadd.f32 %v567_v24, %v542_v23 }
 0x223   :  { %v545_v27 = vpop.f32.mrf.mxu1 }
 0x224   :  { %v569_v28 = vadd.f32 %v568_v26, %v545_v27 }
 0x226   :  { %v570_v29 = vadd.f32 %v2289_v21, %v569_v28 }
 0x228   :  { %v571_v30 = vadd.f32 %v2290_v25, %v570_v29 }
 0x22a   :  { %v572_v31 = vrot.slane %v571_v30, 4 }
 0x22c   :  { %v573_v32 = vadd.f32 %v572_v31, %v571_v30 }
 0x22e   :  { %v574_v33 = vrot.slane %v573_v32, 2 }
 0x230   :  { %v575_v34 = vadd.f32 %v574_v33, %v573_v32 }
 0x232   :  { %v576_v35 = vrot.slane %v575_v34, 1 }
 0x234   :  { %v577_v36 = vadd.f32 %v576_v35, %v575_v34 }
 0x236   :  { %v578_v37 = vmul.f32 0.015625, %v577_v36 }
 0x238   :  { %v2641_v38 = vsub.f32 %v494_v61, %v578_v37  ;;  %v2643_v39 = vsub.f32 %v497_v0, %v578_v37  ;;  %v2645_v40 = vsub.f32 %v2277_v59, %v578_v37  ;;  %v2651_v43 = vsub.f32 %v2278_v62, %v578_v37 }
 0x239   :  { %v2653_v44 = vsub.f32 %v510_v5, %v578_v37  ;;  %v584_v47 = vsub.f32 %v513_v11, %v578_v37  ;;  %v585_v50 = vsub.f32 %v2281_v2, %v578_v37  ;;  %v587_v51 = vsub.f32 %v526_v15, %v578_v37 }
 0x23a   :  { %v611_v41 = vmul.f32 %v2641_v38, %v2641_v38  ;;  %v612_v42 = vmul.f32 %v2643_v39, %v2643_v39  ;;  %v613_v45 = vmul.f32 %v2645_v40, %v2645_v40  ;;  %v614_v48 = vmul.f32 %v2651_v43, %v2651_v43 }
 0x23b   :  { %v615_v52 = vmul.f32 %v2653_v44, %v2653_v44  ;;  %v586_v54 = vsub.f32 %v2282_v7, %v578_v37  ;;  %v588_v55 = vsub.f32 %v529_v19, %v578_v37  ;;  %v616_v56 = vmul.f32 %v584_v47, %v584_v47 }
 0x23c   :  { %v627_v46 = vadd.f32 %v612_v42, %v611_v41  ;;  %v589_v58 = vsub.f32 %v2285_v13, %v578_v37  ;;  %v603_v59 = vmul.f32 0.0, %v587_v51  ;;  %v617_v60 = vmul.f32 %v585_v50, %v585_v50 }
 0x23d   :  { %v590_v62 = vsub.f32 %v2286_v17, %v578_v37  ;;  %v604_v63 = vmul.f32 0.0, %v588_v55  ;;  %v618_v0 = vmul.f32 %v586_v54, %v586_v54  ;;  %v591_v3 = vsub.f32 %v542_v23, %v578_v37 }
 0x23e   :  { %v628_v49 = vadd.f32 %v627_v46, %v613_v45  ;;  %v605_v4 = vmul.f32 0.0, %v589_v58  ;;  %v619_v2 = vmul.f32 %v603_v59, %v603_v59  ;;  %v592_v6 = vsub.f32 %v545_v27, %v578_v37 }
 0x23f   :  { %v606_v8 = vmul.f32 0.0, %v590_v62  ;;  %v620_v9 = vmul.f32 %v604_v63, %v604_v63  ;;  %v593_v7 = vsub.f32 %v2289_v21, %v578_v37  ;;  %v607_v11 = vmul.f32 0.0, %v591_v3 }
 0x240   :  { %v629_v53 = vadd.f32 %v628_v49, %v614_v48  ;;  %v621_v12 = vmul.f32 %v605_v4, %v605_v4  ;;  %v594_v13 = vsub.f32 %v2290_v25, %v578_v37  ;;  %v608_v15 = vmul.f32 0.0, %v592_v6 }
 0x241   :  { %v622_v16 = vmul.f32 %v606_v8, %v606_v8  ;;  %v609_v17 = vmul.f32 0.0, %v593_v7  ;;  %v623_v19 = vmul.f32 %v607_v11, %v607_v11 }
 0x242   :  { %v630_v57 = vadd.f32 %v629_v53, %v615_v52  ;;  %v610_v22 = vmul.f32 0.0, %v594_v13  ;;  %v624_v23 = vmul.f32 %v608_v15, %v608_v15 }
 0x243   :  { %v625_v26 = vmul.f32 %v609_v17, %v609_v17 }
 0x244   :  { %v631_v61 = vadd.f32 %v630_v57, %v616_v56  ;;  %v626_v27 = vmul.f32 %v610_v22, %v610_v22  ;;  %v1918_v56 = vld [vmem:[%s2713_s4] ss:$0 sm:$0xff] }
 0x246   :  { %v632_v1 = vadd.f32 %v631_v61, %v617_v60 }
 0x248   :  { %v633_v5 = vadd.f32 %v632_v1, %v618_v0 }
 0x24a   :  { %v634_v10 = vadd.f32 %v633_v5, %v619_v2  ;;  %v1919_v2 = vld [vmem:[%s2714_s5] ss:$0 sm:$0xff] }
 0x24c   :  { %v635_v14 = vadd.f32 %v634_v10, %v620_v9 }
 0x24e   :  { %v636_v18 = vadd.f32 %v635_v14, %v621_v12 }
 0x250   :  { %v637_v20 = vadd.f32 %v636_v18, %v622_v16 }
 0x252   :  { %v638_v24 = vadd.f32 %v637_v20, %v623_v19 }
 0x254   :  { %v639_v28 = vadd.f32 %v638_v24, %v624_v23 }
 0x256   :  { %v640_v29 = vadd.f32 %v639_v28, %v625_v26 }
 0x258   :  { %v641_v30 = vadd.f32 %v640_v29, %v626_v27 }
 0x25a   :  { %v642_v31 = vrot.slane %v641_v30, 4 }
 0x25c   :  { %v643_v21 = vadd.f32 %v642_v31, %v641_v30 }
 0x25e   :  { %v644_v32 = vrot.slane %v643_v21, 2 }
 0x260   :  { %v645_v33 = vadd.f32 %v644_v32, %v643_v21 }
 0x262   :  { %v646_v34 = vrot.slane %v645_v33, 1 }
 0x264   :  { %v647_v25 = vadd.f32 %v646_v34, %v645_v33 }
 0x266   :  { %v648_v35 = vmul.f32 0.015625, %v647_v25 }
 0x268   :  { %v649_v36 = vadd.f32 1e-05, %v648_v35 }
 0x26a   :  { %2499 = vrsqrt.f32 %v649_v36 }
 0x277   :  { %v2500_v37 = vpop.eup %2499 }
 0x278   :  { %v651_v41 = vmul.f32 %v2500_v37, %v2641_v38  ;;  %v652_v42 = vmul.f32 %v2500_v37, %v2643_v39  ;;  %v653_v45 = vmul.f32 %v2500_v37, %v2645_v40  ;;  %v654_v46 = vmul.f32 %v2500_v37, %v2651_v43 }
 0x279   :  { %v655_v48 = vmul.f32 %v2500_v37, %v2653_v44  ;;  %v656_v49 = vmul.f32 %v2500_v37, %v584_v47  ;;  %v657_v52 = vmul.f32 %v2500_v37, %v585_v50  ;;  %v658_v53 = vmul.f32 %v2500_v37, %v586_v54 }
 0x27a   :  { %v659_v57 = vmul.f32 %v2500_v37, %v587_v51  ;;  %v660_v59 = vmul.f32 %v2500_v37, %v588_v55  ;;  %v661_v60 = vmul.f32 %v2500_v37, %v589_v58  ;;  %v662_v61 = vmul.f32 %v2500_v37, %v590_v62 }
 0x27b   :  { %v663_v38 = vmul.f32 %v2500_v37, %v591_v3  ;;  %v664_v63 = vmul.f32 %v2500_v37, %v592_v6  ;;  %v665_v39 = vmul.f32 %v2500_v37, %v593_v7  ;;  %v666_v0 = vmul.f32 %v2500_v37, %v594_v13 }
 0x27c   :  { %v674_v40 = vmul.f32 %v1918_v56, %v651_v41  ;;  %v675_v1 = vmul.f32 %v1918_v56, %v652_v42  ;;  %v676_v43 = vmul.f32 %v1918_v56, %v653_v45  ;;  %v677_v4 = vmul.f32 %v1918_v56, %v654_v46 }
 0x27d   :  { %v678_v44 = vmul.f32 %v1918_v56, %v655_v48  ;;  %v679_v47 = vmul.f32 %v1918_v56, %v656_v49  ;;  %v680_v50 = vmul.f32 %v1918_v56, %v657_v52  ;;  %v681_v54 = vmul.f32 %v1918_v56, %v658_v53 }
 0x27e   :  { %v682_v51 = vmul.f32 %v1918_v56, %v659_v57  ;;  %v683_v55 = vmul.f32 %v1918_v56, %v660_v59  ;;  %v684_v58 = vmul.f32 %v1918_v56, %v661_v60  ;;  %v685_v62 = vmul.f32 %v1918_v56, %v662_v61 }
 0x27f   :  { %v686_v3 = vmul.f32 %v1918_v56, %v663_v38  ;;  %v687_v5 = vmul.f32 %v1918_v56, %v664_v63  ;;  %v688_v6 = vmul.f32 %v1918_v56, %v665_v39  ;;  %v689_v8 = vmul.f32 %v1918_v56, %v666_v0 }
 0x280   :  { %v697_v9 = vadd.f32 %v1919_v2, %v674_v40  ;;  %v698_v10 = vadd.f32 %v1919_v2, %v675_v1  ;;  %v699_v7 = vadd.f32 %v1919_v2, %v676_v43  ;;  %v700_v11 = vadd.f32 %v1919_v2, %v677_v4  ;;  %v2467_v1 = vld [vmem:[#allocation3] sm:$0xff]  }
 0x281   :  { %v701_v12 = vadd.f32 %v1919_v2, %v678_v44  ;;  %v702_v14 = vadd.f32 %v1919_v2, %v679_v47  ;;  %v703_v13 = vadd.f32 %v1919_v2, %v680_v50  ;;  %v704_v15 = vadd.f32 %v1919_v2, %v681_v54  ;;  %2339 = vmatprep.mubr.bf16.mxu1 %v2467_v1 }
 0x282   :  { %v705_v16 = vadd.f32 %v1919_v2, %v682_v51  ;;  %v706_v18 = vadd.f32 %v1919_v2, %v683_v55  ;;  %v707_v17 = vadd.f32 %v1919_v2, %v684_v58  ;;  %v708_v19 = vadd.f32 %v1919_v2, %v685_v62 }
 0x283   :  { %v709_v20 = vadd.f32 %v1919_v2, %v686_v3  ;;  %v710_v22 = vadd.f32 %v1919_v2, %v687_v5  ;;  %v711_v23 = vadd.f32 %v1919_v2, %v688_v6  ;;  %v712_v24 = vadd.f32 %v1919_v2, %v689_v8 }
 0x284   :  { %v713_v26 = vmax.f32 %v697_v9, 0.0  ;;  %v714_v28 = vmax.f32 %v698_v10, 0.0  ;;  %v715_v27 = vmax.f32 %v699_v7, 0.0  ;;  %v716_v29 = vmax.f32 %v700_v11, 0.0 }
 0x285   :  { %v717_v30 = vmax.f32 %v701_v12, 0.0  ;;  %v718_v31 = vmax.f32 %v702_v14, 0.0  ;;  %v719_v21 = vmax.f32 %v703_v13, 0.0  ;;  %v720_v32 = vmax.f32 %v704_v15, 0.0 }
 0x286   :  { %v721_v33 = vmax.f32 %v705_v16, 0.0  ;;  %v722_v34 = vmax.f32 %v706_v18, 0.0  ;;  %v723_v25 = vmax.f32 %v707_v17, 0.0  ;;  %v724_v35 = vmax.f32 %v708_v19, 0.0  ;;  %v2468_v18 = vld [vmem:[#allocation3 + $0x8] sm:$0xff]   ;;  %v2469_v17 = vld [vmem:[#allocation3 + $0x10] sm:$0xff]  }
 0x287   :  { %v725_v36 = vmax.f32 %v709_v20, 0.0  ;;  %v726_v37 = vmax.f32 %v710_v22, 0.0  ;;  %v727_v41 = vmax.f32 %v711_v23, 0.0  ;;  %v728_v42 = vmax.f32 %v712_v24, 0.0  ;;  %v2470_v19 = vld [vmem:[#allocation3 + $0x18] sm:$0xff]   ;;  %v2471_v20 = vld [vmem:[#allocation3 + $0x20] sm:$0xff]  }
 0x288   :  { %v2040_v45 = vpack.c.bf16 %v714_v28, %v713_v26  ;;  %v2045_v46 = vpack.c.bf16 %v716_v29, %v715_v27  ;;  %v2050_v48 = vpack.c.bf16 %v718_v31, %v717_v30  ;;  %v2055_v49 = vpack.c.bf16 %v720_v32, %v719_v21  ;;  %v2472_v22 = vld [vmem:[#allocation3 + $0x28] sm:$0xff]   ;;  %v2473_v23 = vld [vmem:[#allocation3 + $0x30] sm:$0xff]   ;;  %v2474_v24 = vld [vmem:[#allocation3 + $0x38] sm:$0xff]  }
 0x289   :  { %v2060_v52 = vpack.c.bf16 %v722_v34, %v721_v33  ;;  %v2065_v53 = vpack.c.bf16 %v724_v35, %v723_v25  ;;  %v2070_v56 = vpack.c.bf16 %v726_v37, %v725_v36  ;;  %v2075_v57 = vpack.c.bf16 %v728_v42, %v727_v41  ;;  %v2475_v26 = vld [vmem:[#allocation8 + $0xb8] sm:$0xff]   ;;  %v2476_v28 = vld [vmem:[#allocation8 + $0xb0] sm:$0xff]   ;;  %v2477_v27 = vld [vmem:[#allocation8 + $0xa8] sm:$0xff]  }
 0x28a   :  { %2041 = vst [vmem:[#allocation2] sm:$0xff] %v2040_v45   ;;  %2117 = vst [vmem:[#allocation2 + $0x8] sm:$0xff] %v2045_v46   ;;  %2355 = vmatprep.subr.bf16.mxu0 %v2475_v26  ;;  %v2478_v30 = vld [vmem:[#allocation8 + $0xa0] sm:$0xff]   ;;  %v2479_v32 = vld [vmem:[#allocation8 + $0x98] sm:$0xff]  }
 0x28b   :  { %2118 = vst [vmem:[#allocation2 + $0x10] sm:$0xff] %v2050_v48   ;;  %2119 = vst [vmem:[#allocation2 + $0x18] sm:$0xff] %v2055_v49   ;;  %v2480_v35 = vld [vmem:[#allocation8 + $0x90] sm:$0xff]   ;;  %v2481_v45 = vld [vmem:[#allocation8 + $0x88] sm:$0xff]  }
 0x28c   :  { %2122 = vst [vmem:[#allocation2 + $0x30] sm:$0xff] %v2070_v56   ;;  %2120 = vst [vmem:[#allocation2 + $0x20] sm:$0xff] %v2060_v52   ;;  %v2482_v46 = vld [vmem:[#allocation8 + $0x80] sm:$0xff]  }
 0x28d   :  { %2121 = vst [vmem:[#allocation2 + $0x28] sm:$0xff] %v2065_v53   ;;  %2123 = vst [vmem:[#allocation2 + $0x38] sm:$0xff] %v2075_v57  }
 0x291   :  { %v2459_v59 = vld [vmem:[#allocation2] sm:$0xff]   ;;  %v2460_v60 = vld [vmem:[#allocation2 + $0x8] sm:$0xff]  }
 0x292   :  { %2307 = vmatprep.mubr.bf16.mxu0 %v2459_v59  ;;  %v2461_v61 = vld [vmem:[#allocation2 + $0x10] sm:$0xff]   ;;  %v2462_v38 = vld [vmem:[#allocation2 + $0x18] sm:$0xff]  }
 0x293   :  { %2308 = vmatmul.mubr.bf16.vlgmr.msra.gmra.mxu0 %v2460_v60  ;;  %v2463_v63 = vld [vmem:[#allocation2 + $0x20] sm:$0xff]   ;;  %v2465_v0 = vld [vmem:[#allocation2 + $0x30] sm:$0xff]  }
 0x294   :  { %2311 = vmatprep.mubr.bf16.mxu0 %v2461_v61  ;;  %v2464_v39 = vld [vmem:[#allocation2 + $0x28] sm:$0xff]   ;;  %v2466_v40 = vld [vmem:[#allocation2 + $0x38] sm:$0xff]   ;;  %2356 = vmatpush3.bf16.msra.mxu0 %v2475_v26 }
 0x295   :  { %2357 = vmatprep.subr.bf16.mxu0 %v2476_v28 }
 0x298   :  { %2358 = vmatpush3.bf16.msra.mxu0 %v2476_v28 }
 0x299   :  { %2359 = vmatprep.subr.bf16.mxu0 %v2477_v27 }
 0x29b   :  { %2312 = vmatmul.mubr.bf16.gmra.mxu0 %v2462_v38 }
 0x29c   :  { %2315 = vmatprep.mubr.bf16.mxu0 %v2463_v63  ;;  %2360 = vmatpush3.bf16.msra.mxu0 %v2477_v27 }
 0x29d   :  { %2361 = vmatprep.subr.bf16.mxu0 %v2478_v30 }
 0x2a0   :  { %2362 = vmatpush3.bf16.msra.mxu0 %v2478_v30 }
 0x2a1   :  { %2363 = vmatprep.subr.bf16.mxu0 %v2479_v32 }
 0x2a3   :  { %2316 = vmatmul.mubr.bf16.gmra.mxu0 %v2464_v39 }
 0x2a4   :  { %2319 = vmatprep.mubr.bf16.mxu0 %v2465_v0  ;;  %2364 = vmatpush3.bf16.msra.mxu0 %v2479_v32 }
 0x2a5   :  { %2365 = vmatprep.subr.bf16.mxu0 %v2480_v35 }
 0x2a8   :  { %2366 = vmatpush3.bf16.msra.mxu0 %v2480_v35 }
 0x2a9   :  { %2367 = vmatprep.subr.bf16.mxu0 %v2481_v45 }
 0x2ab   :  { %2320 = vmatmul.mubr.bf16.gmra.mxu0 %v2466_v40 }
 0x2ac   :  { %2368 = vmatpush3.bf16.msra.mxu0 %v2481_v45 }
 0x2ad   :  { %2369 = vmatprep.subr.bf16.mxu0 %v2482_v46 }
 0x2b0   :  { %2370 = vmatpush3.bf16.msra.mxu0 %v2482_v46 }
 0x353   :  { %v2309_v43 = vpop.f32.mrf.mxu0 }
 0x355   :  { %v972_v4 = vpop.f32.mrf.mxu0 }
 0x357   :  { %v2310_v44 = vpop.f32.mrf.mxu0 }
 0x358   :  { %v1052_v15 = vpack.c.bf16 %v2310_v44, %v2309_v43 }
 0x359   :  { %v975_v47 = vpop.f32.mrf.mxu0 }
 0x35a   :  { %v1051_v16 = vpack.c.bf16 %v975_v47, %v972_v4 }
 0x35b   :  { %v2313_v50 = vpop.f32.mrf.mxu0 }
 0x35d   :  { %v988_v54 = vpop.f32.mrf.mxu0 }
 0x35f   :  { %v2314_v2 = vpop.f32.mrf.mxu0 }
 0x360   :  { %v1054_v14 = vpack.c.bf16 %v2314_v2, %v2313_v50 }
 0x361   :  { %v991_v51 = vpop.f32.mrf.mxu0 }
 0x362   :  { %v1053_v13 = vpack.c.bf16 %v991_v51, %v988_v54 }
 0x363   :  { %v2317_v55 = vpop.f32.mrf.mxu0 }
 0x365   :  { %v1004_v58 = vpop.f32.mrf.mxu0 }
 0x367   :  { %v2318_v62 = vpop.f32.mrf.mxu0 }
 0x368   :  { %v1056_v11 = vpack.c.bf16 %v2318_v62, %v2317_v55 }
 0x369   :  { %v1007_v3 = vpop.f32.mrf.mxu0 }
 0x36a   :  { %v1055_v12 = vpack.c.bf16 %v1007_v3, %v1004_v58 }
 0x36b   :  { %v2321_v5 = vpop.f32.mrf.mxu0 }
 0x36d   :  { %v1020_v6 = vpop.f32.mrf.mxu0 }
 0x36f   :  { %v2322_v8 = vpop.f32.mrf.mxu0 }
 0x370   :  { %v1058_v9 = vpack.c.bf16 %v2322_v8, %v2321_v5 }
 0x371   :  { %v1023_v10 = vpop.f32.mrf.mxu0 }
 0x372   :  { %v1057_v7 = vpack.c.bf16 %v1023_v10, %v1020_v6  ;;  %2323 = vmatprep.subr.bf16.mxu1 %v1058_v9 }
 0x373   :  { %2324 = vmatpush3.bf16.msra.mxu1 %v1058_v9 }
 0x374   :  { %2325 = vmatprep.subr.bf16.mxu1 %v1057_v7 }
 0x377   :  { %2326 = vmatpush3.bf16.msra.mxu1 %v1057_v7 }
 0x378   :  { %2327 = vmatprep.subr.bf16.mxu1 %v1056_v11 }
 0x37b   :  { %2328 = vmatpush3.bf16.msra.mxu1 %v1056_v11 }
 0x37c   :  { %2329 = vmatprep.subr.bf16.mxu1 %v1055_v12 }
 0x37f   :  { %2330 = vmatpush3.bf16.msra.mxu1 %v1055_v12 }
 0x380   :  { %2331 = vmatprep.subr.bf16.mxu1 %v1054_v14 }
 0x383   :  { %2332 = vmatpush3.bf16.msra.mxu1 %v1054_v14 }
 0x384   :  { %2333 = vmatprep.subr.bf16.mxu1 %v1053_v13 }
 0x387   :  { %2334 = vmatpush3.bf16.msra.mxu1 %v1053_v13 }
 0x388   :  { %2335 = vmatprep.subr.bf16.mxu1 %v1052_v15 }
 0x38b   :  { %2336 = vmatpush3.bf16.msra.mxu1 %v1052_v15 }
 0x38c   :  { %2337 = vmatprep.subr.bf16.mxu1 %v1051_v16 }
 0x38f   :  { %2338 = vmatpush3.bf16.msra.mxu1 %v1051_v16 }
 0x392   :  { %2340 = vmatmul.mubr.bf16.vlgmr.msra.gmra.mxu1 %v2468_v18 }
 0x393   :  { %2343 = vmatprep.mubr.bf16.mxu1 %v2469_v17 }
 0x39a   :  { %2344 = vmatmul.mubr.bf16.gmra.mxu1 %v2470_v19 }
 0x39b   :  { %2347 = vmatprep.mubr.bf16.mxu1 %v2471_v20 }
 0x3a2   :  { %2348 = vmatmul.mubr.bf16.gmra.mxu1 %v2472_v22 }
 0x3a3   :  { %2351 = vmatprep.mubr.bf16.mxu1 %v2473_v23 }
 0x3aa   :  { %2352 = vmatmul.mubr.bf16.gmra.mxu1 %v2474_v24 }
 0x452   :  { %v2341_v29 = vpop.f32.mrf.mxu1 }
 0x454   :  { %v1141_v31 = vpop.f32.mrf.mxu1 }
 0x456   :  { %v2342_v21 = vpop.f32.mrf.mxu1 }
 0x458   :  { %v1144_v33 = vpop.f32.mrf.mxu1 }
 0x459   :  { %v1204_v34 = vadd.f32 %v1144_v33, %v1141_v31 }
 0x45a   :  { %v2345_v25 = vpop.f32.mrf.mxu1 }
 0x45b   :  { %v1205_v36 = vadd.f32 %v2341_v29, %v1204_v34 }
 0x45c   :  { %v1157_v37 = vpop.f32.mrf.mxu1 }
 0x45d   :  { %v1206_v41 = vadd.f32 %v2342_v21, %v1205_v36 }
 0x45e   :  { %v2346_v42 = vpop.f32.mrf.mxu1 }
 0x45f   :  { %v1207_v48 = vadd.f32 %v1206_v41, %v1157_v37 }
 0x460   :  { %v1160_v49 = vpop.f32.mrf.mxu1 }
 0x461   :  { %v1208_v52 = vadd.f32 %v1207_v48, %v1160_v49 }
 0x462   :  { %v2349_v53 = vpop.f32.mrf.mxu1 }
 0x463   :  { %v1209_v56 = vadd.f32 %v2345_v25, %v1208_v52 }
 0x464   :  { %v1173_v57 = vpop.f32.mrf.mxu1 }
 0x465   :  { %v1210_v59 = vadd.f32 %v2346_v42, %v1209_v56 }
 0x466   :  { %v2350_v60 = vpop.f32.mrf.mxu1 }
 0x467   :  { %v1211_v61 = vadd.f32 %v1210_v59, %v1173_v57 }
 0x468   :  { %v1176_v38 = vpop.f32.mrf.mxu1 }
 0x469   :  { %v1212_v63 = vadd.f32 %v1211_v61, %v1176_v38 }
 0x46a   :  { %v2353_v39 = vpop.f32.mrf.mxu1 }
 0x46b   :  { %v1213_v0 = vadd.f32 %v2349_v53, %v1212_v63 }
 0x46c   :  { %v1189_v40 = vpop.f32.mrf.mxu1 }
 0x46d   :  { %v1214_v1 = vadd.f32 %v2350_v60, %v1213_v0 }
 0x46e   :  { %v2354_v43 = vpop.f32.mrf.mxu1 }
 0x46f   :  { %v1215_v4 = vadd.f32 %v1214_v1, %v1189_v40 }
 0x470   :  { %v1192_v44 = vpop.f32.mrf.mxu1 }
 0x471   :  { %v1216_v47 = vadd.f32 %v1215_v4, %v1192_v44 }
 0x473   :  { %v1217_v50 = vadd.f32 %v2353_v39, %v1216_v47 }
 0x475   :  { %v1218_v54 = vadd.f32 %v2354_v43, %v1217_v50 }
 0x477   :  { %v1219_v2 = vrot.slane %v1218_v54, 4 }
 0x479   :  { %v1220_v51 = vadd.f32 %v1219_v2, %v1218_v54 }
 0x47b   :  { %v1221_v55 = vrot.slane %v1220_v51, 2 }
 0x47d   :  { %v1222_v58 = vadd.f32 %v1221_v55, %v1220_v51 }
 0x47f   :  { %v1223_v62 = vrot.slane %v1222_v58, 1 }
 0x481   :  { %v1224_v3 = vadd.f32 %v1223_v62, %v1222_v58 }
 0x483   :  { %v1225_v5 = vmul.f32 0.015625, %v1224_v3 }
 0x485   :  { %v2672_v6 = vsub.f32 %v1141_v31, %v1225_v5  ;;  %v2674_v8 = vsub.f32 %v1144_v33, %v1225_v5  ;;  %v2676_v9 = vsub.f32 %v2341_v29, %v1225_v5  ;;  %v2682_v11 = vsub.f32 %v2342_v21, %v1225_v5 }
 0x486   :  { %v2684_v12 = vsub.f32 %v1157_v37, %v1225_v5  ;;  %v1231_v15 = vsub.f32 %v1160_v49, %v1225_v5  ;;  %v1232_v17 = vsub.f32 %v2345_v25, %v1225_v5  ;;  %v1234_v19 = vsub.f32 %v1173_v57, %v1225_v5 }
 0x487   :  { %v1258_v10 = vmul.f32 %v2672_v6, %v2672_v6  ;;  %v1259_v7 = vmul.f32 %v2674_v8, %v2674_v8  ;;  %v1260_v14 = vmul.f32 %v2676_v9, %v2676_v9  ;;  %v1261_v16 = vmul.f32 %v2682_v11, %v2682_v11 }
 0x488   :  { %v1262_v20 = vmul.f32 %v2684_v12, %v2684_v12  ;;  %v1233_v23 = vsub.f32 %v2346_v42, %v1225_v5  ;;  %v1235_v24 = vsub.f32 %v1176_v38, %v1225_v5  ;;  %v1263_v26 = vmul.f32 %v1231_v15, %v1231_v15 }
 0x489   :  { %v1274_v13 = vadd.f32 %v1259_v7, %v1258_v10  ;;  %v1236_v27 = vsub.f32 %v2349_v53, %v1225_v5  ;;  %v1250_v29 = vmul.f32 0.0, %v1234_v19  ;;  %v1264_v30 = vmul.f32 %v1232_v17, %v1232_v17 }
 0x48a   :  { %v1237_v21 = vsub.f32 %v2350_v60, %v1225_v5  ;;  %v1251_v32 = vmul.f32 0.0, %v1235_v24  ;;  %v1265_v33 = vmul.f32 %v1233_v23, %v1233_v23  ;;  %v1238_v35 = vsub.f32 %v1189_v40, %v1225_v5 }
 0x48b   :  { %v1275_v18 = vadd.f32 %v1274_v13, %v1260_v14  ;;  %v1252_v36 = vmul.f32 0.0, %v1236_v27  ;;  %v1266_v25 = vmul.f32 %v1250_v29, %v1250_v29  ;;  %v1239_v41 = vsub.f32 %v1192_v44, %v1225_v5 }
 0x48c   :  { %v1253_v45 = vmul.f32 0.0, %v1237_v21  ;;  %v1267_v46 = vmul.f32 %v1251_v32, %v1251_v32  ;;  %v1240_v42 = vsub.f32 %v2353_v39, %v1225_v5  ;;  %v1254_v49 = vmul.f32 0.0, %v1238_v35 }
 0x48d   :  { %v1276_v22 = vadd.f32 %v1275_v18, %v1261_v16  ;;  %v1268_v52 = vmul.f32 %v1252_v36, %v1252_v36  ;;  %v1241_v53 = vsub.f32 %v2354_v43, %v1225_v5  ;;  %v1255_v57 = vmul.f32 0.0, %v1239_v41 }
 0x48e   :  { %v1269_v59 = vmul.f32 %v1253_v45, %v1253_v45  ;;  %v1256_v60 = vmul.f32 0.0, %v1240_v42  ;;  %v1270_v38 = vmul.f32 %v1254_v49, %v1254_v49 }
 0x48f   :  { %v1277_v28 = vadd.f32 %v1276_v22, %v1262_v20  ;;  %v1257_v0 = vmul.f32 0.0, %v1241_v53  ;;  %v1271_v40 = vmul.f32 %v1255_v57, %v1255_v57 }
 0x490   :  { %v1272_v4 = vmul.f32 %v1256_v60, %v1256_v60 }
 0x491   :  { %v1278_v31 = vadd.f32 %v1277_v28, %v1263_v26  ;;  %v1273_v44 = vmul.f32 %v1257_v0, %v1257_v0  ;;  %v1961_v26 = vld [vmem:[%s2713_s4 + $0x1] ss:$0 sm:$0xff] }
 0x493   :  { %v1279_v34 = vadd.f32 %v1278_v31, %v1264_v30 }
 0x495   :  { %v1280_v37 = vadd.f32 %v1279_v34, %v1265_v33 }
 0x497   :  { %v1281_v48 = vadd.f32 %v1280_v37, %v1266_v25  ;;  %v1963_v25 = vld [vmem:[%s2714_s5 + $0x1] ss:$0 sm:$0xff] }
 0x499   :  { %v1282_v56 = vadd.f32 %v1281_v48, %v1267_v46 }
 0x49b   :  { %v1283_v61 = vadd.f32 %v1282_v56, %v1268_v52 }
 0x49d   :  { %v1284_v63 = vadd.f32 %v1283_v61, %v1269_v59 }
 0x49f   :  { %v1285_v1 = vadd.f32 %v1284_v63, %v1270_v38 }
 0x4a1   :  { %v1286_v47 = vadd.f32 %v1285_v1, %v1271_v40 }
 0x4a3   :  { %v1287_v50 = vadd.f32 %v1286_v47, %v1272_v4 }
 0x4a5   :  { %v1288_v54 = vadd.f32 %v1287_v50, %v1273_v44 }
 0x4a7   :  { %v1289_v2 = vrot.slane %v1288_v54, 4 }
 0x4a9   :  { %v1290_v39 = vadd.f32 %v1289_v2, %v1288_v54 }
 0x4ab   :  { %v1291_v51 = vrot.slane %v1290_v39, 2 }
 0x4ad   :  { %v1292_v55 = vadd.f32 %v1291_v51, %v1290_v39 }
 0x4af   :  { %v1293_v58 = vrot.slane %v1292_v55, 1 }
 0x4b1   :  { %v1294_v43 = vadd.f32 %v1293_v58, %v1292_v55 }
 0x4b3   :  { %v1295_v62 = vmul.f32 0.015625, %v1294_v43 }
 0x4b5   :  { %v1296_v3 = vadd.f32 1e-05, %v1295_v62 }
 0x4b7   :  { %2501 = vrsqrt.f32 %v1296_v3 }
 0x4c4   :  { %v2502_v5 = vpop.eup %2501 }
 0x4c5   :  { %v1298_v10 = vmul.f32 %v2502_v5, %v2672_v6  ;;  %v1299_v7 = vmul.f32 %v2502_v5, %v2674_v8  ;;  %v1300_v14 = vmul.f32 %v2502_v5, %v2676_v9  ;;  %v1301_v13 = vmul.f32 %v2502_v5, %v2682_v11 }
 0x4c6   :  { %v1302_v16 = vmul.f32 %v2502_v5, %v2684_v12  ;;  %v1303_v18 = vmul.f32 %v2502_v5, %v1231_v15  ;;  %v1304_v20 = vmul.f32 %v2502_v5, %v1232_v17  ;;  %v1305_v22 = vmul.f32 %v2502_v5, %v1233_v23 }
 0x4c7   :  { %v1306_v28 = vmul.f32 %v2502_v5, %v1234_v19  ;;  %v1307_v29 = vmul.f32 %v2502_v5, %v1235_v24  ;;  %v1308_v30 = vmul.f32 %v2502_v5, %v1236_v27  ;;  %v1309_v31 = vmul.f32 %v2502_v5, %v1237_v21 }
 0x4c8   :  { %v1310_v6 = vmul.f32 %v2502_v5, %v1238_v35  ;;  %v1311_v32 = vmul.f32 %v2502_v5, %v1239_v41  ;;  %v1312_v8 = vmul.f32 %v2502_v5, %v1240_v42  ;;  %v1313_v33 = vmul.f32 %v2502_v5, %v1241_v53 }
 0x4c9   :  { %v1322_v9 = vmul.f32 %v1961_v26, %v1298_v10  ;;  %v1323_v34 = vmul.f32 %v1961_v26, %v1299_v7  ;;  %v1324_v11 = vmul.f32 %v1961_v26, %v1300_v14  ;;  %v1325_v36 = vmul.f32 %v1961_v26, %v1301_v13 }
 0x4ca   :  { %v1326_v12 = vmul.f32 %v1961_v26, %v1302_v16  ;;  %v1327_v15 = vmul.f32 %v1961_v26, %v1303_v18  ;;  %v1328_v17 = vmul.f32 %v1961_v26, %v1304_v20  ;;  %v1329_v23 = vmul.f32 %v1961_v26, %v1305_v22 }
 0x4cb   :  { %v1330_v19 = vmul.f32 %v1961_v26, %v1306_v28  ;;  %v1331_v24 = vmul.f32 %v1961_v26, %v1307_v29  ;;  %v1332_v27 = vmul.f32 %v1961_v26, %v1308_v30  ;;  %v1333_v21 = vmul.f32 %v1961_v26, %v1309_v31 }
 0x4cc   :  { %v1334_v35 = vmul.f32 %v1961_v26, %v1310_v6  ;;  %v1335_v37 = vmul.f32 %v1961_v26, %v1311_v32  ;;  %v1336_v41 = vmul.f32 %v1961_v26, %v1312_v8  ;;  %v1337_v45 = vmul.f32 %v1961_v26, %v1313_v33 }
 0x4cd   :  { %v1346_v46 = vadd.f32 %v1963_v25, %v1322_v9  ;;  %v1347_v48 = vadd.f32 %v1963_v25, %v1323_v34  ;;  %v1348_v42 = vadd.f32 %v1963_v25, %v1324_v11  ;;  %v1349_v49 = vadd.f32 %v1963_v25, %v1325_v36  ;;  %v2491_v34 = vld [vmem:[#allocation3] sm:$0xff]  }
 0x4ce   :  { %v1350_v52 = vadd.f32 %v1963_v25, %v1326_v12  ;;  %v1351_v56 = vadd.f32 %v1963_v25, %v1327_v15  ;;  %v1352_v53 = vadd.f32 %v1963_v25, %v1328_v17  ;;  %v1353_v57 = vadd.f32 %v1963_v25, %v1329_v23  ;;  %2403 = vmatprep.mubr.bf16.mxu1 %v2491_v34 }
 0x4cf   :  { %v1354_v59 = vadd.f32 %v1963_v25, %v1330_v19  ;;  %v1355_v61 = vadd.f32 %v1963_v25, %v1331_v24  ;;  %v1356_v60 = vadd.f32 %v1963_v25, %v1332_v27  ;;  %v1357_v38 = vadd.f32 %v1963_v25, %v1333_v21 }
 0x4d0   :  { %v1358_v63 = vadd.f32 %v1963_v25, %v1334_v35  ;;  %v1359_v0 = vadd.f32 %v1963_v25, %v1335_v37  ;;  %v1360_v40 = vadd.f32 %v1963_v25, %v1336_v41  ;;  %v1361_v1 = vadd.f32 %v1963_v25, %v1337_v45 }
 0x4d1   :  { %v1362_v4 = vmax.f32 %v1346_v46, 0.0  ;;  %v1363_v47 = vmax.f32 %v1347_v48, 0.0  ;;  %v1364_v44 = vmax.f32 %v1348_v42, 0.0  ;;  %v1365_v50 = vmax.f32 %v1349_v49, 0.0 }
 0x4d2   :  { %v1366_v54 = vmax.f32 %v1350_v52, 0.0  ;;  %v1367_v2 = vmax.f32 %v1351_v56, 0.0  ;;  %v1368_v39 = vmax.f32 %v1352_v53, 0.0  ;;  %v1369_v51 = vmax.f32 %v1353_v57, 0.0 }
 0x4d3   :  { %v1370_v55 = vmax.f32 %v1354_v59, 0.0  ;;  %v1371_v58 = vmax.f32 %v1355_v61, 0.0  ;;  %v1372_v43 = vmax.f32 %v1356_v60, 0.0  ;;  %v1373_v62 = vmax.f32 %v1357_v38, 0.0  ;;  %v2492_v61 = vld [vmem:[#allocation3 + $0x8] sm:$0xff]   ;;  %v2493_v60 = vld [vmem:[#allocation3 + $0x10] sm:$0xff]  }
 0x4d4   :  { %v1374_v3 = vmax.f32 %v1358_v63, 0.0  ;;  %v1375_v5 = vmax.f32 %v1359_v0, 0.0  ;;  %v1376_v10 = vmax.f32 %v1360_v40, 0.0  ;;  %v1377_v7 = vmax.f32 %v1361_v1, 0.0  ;;  %v2494_v38 = vld [vmem:[#allocation3 + $0x18] sm:$0xff]   ;;  %v2495_v63 = vld [vmem:[#allocation3 + $0x20] sm:$0xff]  }
 0x4d5   :  { %v2080_v14 = vpack.c.bf16 %v1363_v47, %v1362_v4  ;;  %v2085_v13 = vpack.c.bf16 %v1365_v50, %v1364_v44  ;;  %v2090_v16 = vpack.c.bf16 %v1367_v2, %v1366_v54  ;;  %v2095_v18 = vpack.c.bf16 %v1369_v51, %v1368_v39  ;;  %v2496_v0 = vld [vmem:[#allocation3 + $0x28] sm:$0xff]   ;;  %v2497_v40 = vld [vmem:[#allocation3 + $0x30] sm:$0xff]   ;;  %v2498_v1 = vld [vmem:[#allocation3 + $0x38] sm:$0xff]  }
 0x4d6   :  { %v2100_v20 = vpack.c.bf16 %v1371_v58, %v1370_v55  ;;  %v2105_v22 = vpack.c.bf16 %v1373_v62, %v1372_v43  ;;  %v2110_v26 = vpack.c.bf16 %v1375_v5, %v1374_v3  ;;  %v2115_v28 = vpack.c.bf16 %v1377_v7, %v1376_v10  ;;  %v1996_v4 = vld [vmem:[%s2712_s3] ss:$0 sm:$0xff]  ;;  %s2594_s3 = smov [#allocation9]  }
 0x4d7   :  { %2081 = vst [vmem:[#allocation2] sm:$0xff] %v2080_v14   ;;  %2124 = vst [vmem:[#allocation2 + $0x8] sm:$0xff] %v2085_v13   ;;  %s1881_s19 = sshll.u32 %s2594_s3, 4  ;;  %s1882_s19 = int_to_ptr.vmem [resolvable:$true] %s1881_s19 }
 0x4d8   :  { %2125 = vst [vmem:[#allocation2 + $0x10] sm:$0xff] %v2090_v16   ;;  %2126 = vst [vmem:[#allocation2 + $0x18] sm:$0xff] %v2095_v18   ;;  %s2563_s20 = scalar_lea.vmem %s1882_s19, 2048  ;;  %p2568_p2 = scmp.lt.s32.totalorder %s1882_s19, %s1882_s19 }
 0x4d9   :  { %2129 = vst [vmem:[#allocation2 + $0x30] sm:$0xff] %v2110_v26   ;;  %2127 = vst [vmem:[#allocation2 + $0x20] sm:$0xff] %v2100_v20   ;;  %p2564_p1 = scmp.ne.s32.totalorder %s1882_s19, %s2563_s20  ;;  %p2569_p3 = scmp.lt.s32.totalorder %s2563_s20, %s2563_s20 }
 0x4da   :  { %2128 = vst [vmem:[#allocation2 + $0x28] sm:$0xff] %v2105_v22   ;;  %2130 = vst [vmem:[#allocation2 + $0x38] sm:$0xff] %v2115_v28  }
 0x4db   :  { %p2570_p4 = por %p2569_p3, %p2568_p2 }
 0x4dd   :  { %p2571_p5 = pnand %p2570_p4, %p2564_p1 }
 0x4de   :  { %v2483_v29 = vld [vmem:[#allocation2] sm:$0xff]   ;;  %v2484_v30 = vld [vmem:[#allocation2 + $0x8] sm:$0xff]  }
 0x4df   :  { %2371 = vmatprep.mubr.bf16.mxu0 %v2483_v29  ;;  %v2485_v31 = vld [vmem:[#allocation2 + $0x10] sm:$0xff]   ;;  %v2486_v6 = vld [vmem:[#allocation2 + $0x18] sm:$0xff]  }
 0x4e0   :  { %2372 = vmatmul.mubr.bf16.vlgmr.msra.gmra.mxu0 %v2484_v30  ;;  %v2487_v32 = vld [vmem:[#allocation2 + $0x20] sm:$0xff]   ;;  %v2489_v33 = vld [vmem:[#allocation2 + $0x30] sm:$0xff]  }
 0x4e1   :  { %2375 = vmatprep.mubr.bf16.mxu0 %v2485_v31  ;;  %v2488_v8 = vld [vmem:[#allocation2 + $0x28] sm:$0xff]   ;;  %v2490_v9 = vld [vmem:[#allocation2 + $0x38] sm:$0xff]  }
 0x4e8   :  { %2376 = vmatmul.mubr.bf16.gmra.mxu0 %v2486_v6 }
 0x4e9   :  { %2379 = vmatprep.mubr.bf16.mxu0 %v2487_v32 }
 0x4f0   :  { %2380 = vmatmul.mubr.bf16.gmra.mxu0 %v2488_v8 }
 0x4f1   :  { %2383 = vmatprep.mubr.bf16.mxu0 %v2489_v33 }
 0x4f8   :  { %2384 = vmatmul.mubr.bf16.gmra.mxu0 %v2490_v9 }
 0x5a0   :  { %v2373_v11 = vpop.f32.mrf.mxu0 }
 0x5a2   :  { %v1621_v36 = vpop.f32.mrf.mxu0 }
 0x5a4   :  { %v2374_v12 = vpop.f32.mrf.mxu0 }
 0x5a5   :  { %v1701_v57 = vpack.c.bf16 %v2374_v12, %v2373_v11 }
 0x5a6   :  { %v1624_v15 = vpop.f32.mrf.mxu0 }
 0x5a7   :  { %v1700_v59 = vpack.c.bf16 %v1624_v15, %v1621_v36 }
 0x5a8   :  { %v2377_v17 = vpop.f32.mrf.mxu0 }
 0x5aa   :  { %v1637_v23 = vpop.f32.mrf.mxu0 }
 0x5ac   :  { %v2378_v25 = vpop.f32.mrf.mxu0 }
 0x5ad   :  { %v1703_v56 = vpack.c.bf16 %v2378_v25, %v2377_v17 }
 0x5ae   :  { %v1640_v19 = vpop.f32.mrf.mxu0 }
 0x5af   :  { %v1702_v53 = vpack.c.bf16 %v1640_v19, %v1637_v23 }
 0x5b0   :  { %v2381_v24 = vpop.f32.mrf.mxu0 }
 0x5b2   :  { %v1653_v27 = vpop.f32.mrf.mxu0 }
 0x5b4   :  { %v2382_v21 = vpop.f32.mrf.mxu0 }
 0x5b5   :  { %v1705_v49 = vpack.c.bf16 %v2382_v21, %v2381_v24 }
 0x5b6   :  { %v1656_v35 = vpop.f32.mrf.mxu0 }
 0x5b7   :  { %v1704_v52 = vpack.c.bf16 %v1656_v35, %v1653_v27 }
 0x5b8   :  { %v2385_v37 = vpop.f32.mrf.mxu0 }
 0x5ba   :  { %v1669_v41 = vpop.f32.mrf.mxu0 }
 0x5bc   :  { %v2386_v45 = vpop.f32.mrf.mxu0 }
 0x5bd   :  { %v1707_v46 = vpack.c.bf16 %v2386_v45, %v2385_v37 }
 0x5be   :  { %v1672_v48 = vpop.f32.mrf.mxu0 }
 0x5bf   :  { %v1706_v42 = vpack.c.bf16 %v1672_v48, %v1669_v41  ;;  %2387 = vmatprep.subr.bf16.mxu1 %v1707_v46 }
 0x5c0   :  { %2388 = vmatpush3.bf16.msra.mxu1 %v1707_v46 }
 0x5c1   :  { %2389 = vmatprep.subr.bf16.mxu1 %v1706_v42 }
 0x5c4   :  { %2390 = vmatpush3.bf16.msra.mxu1 %v1706_v42 }
 0x5c5   :  { %2391 = vmatprep.subr.bf16.mxu1 %v1705_v49 }
 0x5c8   :  { %2392 = vmatpush3.bf16.msra.mxu1 %v1705_v49 }
 0x5c9   :  { %2393 = vmatprep.subr.bf16.mxu1 %v1704_v52 }
 0x5cc   :  { %2394 = vmatpush3.bf16.msra.mxu1 %v1704_v52 }
 0x5cd   :  { %2395 = vmatprep.subr.bf16.mxu1 %v1703_v56 }
 0x5d0   :  { %2396 = vmatpush3.bf16.msra.mxu1 %v1703_v56 }
 0x5d1   :  { %2397 = vmatprep.subr.bf16.mxu1 %v1702_v53 }
 0x5d4   :  { %2398 = vmatpush3.bf16.msra.mxu1 %v1702_v53 }
 0x5d5   :  { %2399 = vmatprep.subr.bf16.mxu1 %v1701_v57 }
 0x5d8   :  { %2400 = vmatpush3.bf16.msra.mxu1 %v1701_v57 }
 0x5d9   :  { %2401 = vmatprep.subr.bf16.mxu1 %v1700_v59 }
 0x5dc   :  { %2402 = vmatpush3.bf16.msra.mxu1 %v1700_v59 }
 0x5df   :  { %2404 = vmatmul.mubr.bf16.vlgmr.msra.gmra.mxu1 %v2492_v61 }
 0x5e0   :  { %2407 = vmatprep.mubr.bf16.mxu1 %v2493_v60 }
 0x5e7   :  { %2408 = vmatmul.mubr.bf16.gmra.mxu1 %v2494_v38 }
 0x5e8   :  { %2411 = vmatprep.mubr.bf16.mxu1 %v2495_v63 }
 0x5ef   :  { %2412 = vmatmul.mubr.bf16.gmra.mxu1 %v2496_v0 }
 0x5f0   :  { %2415 = vmatprep.mubr.bf16.mxu1 %v2497_v40 }
 0x5f7   :  { %2416 = vmatmul.mubr.bf16.gmra.mxu1 %v2498_v1 }
 0x69f   :  { %v2405_v47 = vpop.f32.mrf.mxu1 }
 0x6a0   :  { %v1806_v44 = vadd.f32 %v2405_v47, %v1996_v4 }
 0x6a1   :  { %v1797_v50 = vpop.f32.mrf.mxu1 }
 0x6a2   :  { %1862 = vst [vmem:[#allocation9 + $0x10] sm:$0xff] %v1806_v44  ;;  %v1798_v54 = vadd.f32 %v1996_v4, %v1797_v50 }
 0x6a3   :  { %v2406_v2 = vpop.f32.mrf.mxu1 }
 0x6a4   :  { %1860 = vst [vmem:[#allocation9] sm:$0xff] %v1798_v54  ;;  %v1809_v39 = vadd.f32 %v2406_v2, %v1996_v4 }
 0x6a5   :  { %v1800_v51 = vpop.f32.mrf.mxu1 }
 0x6a6   :  { %1863 = vst [vmem:[#allocation9 + $0x18] sm:$0xff] %v1809_v39  ;;  %v1801_v55 = vadd.f32 %v1996_v4, %v1800_v51 }
 0x6a7   :  { %v2409_v58 = vpop.f32.mrf.mxu1 }
 0x6a8   :  { %1861 = vst [vmem:[#allocation9 + $0x8] sm:$0xff] %v1801_v55  ;;  %v1822_v43 = vadd.f32 %v2409_v58, %v1996_v4 }
 0x6a9   :  { %v1813_v62 = vpop.f32.mrf.mxu1 }
 0x6aa   :  { %1866 = vst [vmem:[#allocation9 + $0x30] sm:$0xff] %v1822_v43  ;;  %v1814_v3 = vadd.f32 %v1996_v4, %v1813_v62 }
 0x6ab   :  { %v2410_v5 = vpop.f32.mrf.mxu1 }
 0x6ac   :  { %1864 = vst [vmem:[#allocation9 + $0x20] sm:$0xff] %v1814_v3  ;;  %v1825_v10 = vadd.f32 %v2410_v5, %v1996_v4 }
 0x6ad   :  { %v1816_v7 = vpop.f32.mrf.mxu1 }
 0x6ae   :  { %1867 = vst [vmem:[#allocation9 + $0x38] sm:$0xff] %v1825_v10  ;;  %v1817_v14 = vadd.f32 %v1996_v4, %v1816_v7 }
 0x6af   :  { %v2413_v13 = vpop.f32.mrf.mxu1 }
 0x6b0   :  { %1865 = vst [vmem:[#allocation9 + $0x28] sm:$0xff] %v1817_v14  ;;  %v1838_v16 = vadd.f32 %v2413_v13, %v1996_v4 }
 0x6b1   :  { %v1829_v18 = vpop.f32.mrf.mxu1 }
 0x6b2   :  { %1870 = vst [vmem:[#allocation9 + $0x50] sm:$0xff] %v1838_v16  ;;  %v1830_v20 = vadd.f32 %v1996_v4, %v1829_v18 }
 0x6b3   :  { %v2414_v22 = vpop.f32.mrf.mxu1 }
 0x6b4   :  { %1868 = vst [vmem:[#allocation9 + $0x40] sm:$0xff] %v1830_v20  ;;  %v1841_v26 = vadd.f32 %v2414_v22, %v1996_v4 }
 0x6b5   :  { %v1832_v28 = vpop.f32.mrf.mxu1 }
 0x6b6   :  { %1871 = vst [vmem:[#allocation9 + $0x58] sm:$0xff] %v1841_v26  ;;  %v1833_v29 = vadd.f32 %v1996_v4, %v1832_v28 }
 0x6b7   :  { %v2417_v30 = vpop.f32.mrf.mxu1 }
 0x6b8   :  { %1869 = vst [vmem:[#allocation9 + $0x48] sm:$0xff] %v1833_v29  ;;  %v1854_v31 = vadd.f32 %v2417_v30, %v1996_v4 }
 0x6b9   :  { %v1845_v6 = vpop.f32.mrf.mxu1 }
 0x6ba   :  { %1874 = vst [vmem:[#allocation9 + $0x70] sm:$0xff] %v1854_v31  ;;  %v1846_v32 = vadd.f32 %v1996_v4, %v1845_v6 }
 0x6bb   :  { %v2418_v8 = vpop.f32.mrf.mxu1 }
 0x6bc   :  { %1872 = vst [vmem:[#allocation9 + $0x60] sm:$0xff] %v1846_v32  ;;  %v1857_v33 = vadd.f32 %v2418_v8, %v1996_v4 }
 0x6bd   :  { %v1848_v9 = vpop.f32.mrf.mxu1 }
 0x6be   :  { %1875 = vst [vmem:[#allocation9 + $0x78] sm:$0xff] %v1857_v33  ;;  %v1849_v34 = vadd.f32 %v1996_v4, %v1848_v9 }
 0x6c0   :  { %1873 = vst [vmem:[#allocation9 + $0x68] sm:$0xff] %v1849_v34 }
 0x6c1   :  { %2574 = shalt.err (!%p2571_p5)
}
 0x6c2   :  { %s2595_s21 = smov 128   ;;  %s2596_s22 = smov 8  }
 0x6c3   :  { %1887 = dma.vmem_to_hbm [thread:$0]  %s1882_s19, 2048, %s2715_s6, [#allocation5], %s2595_s21, %s2595_s21, %s2596_s22  }
 0x6c4   :  { %2587 = dma.done.wait [#allocation5], 2048  }
 0x6c5   :  { %2588 = vsyncadd [#allocation5], 4294965248 }
 0x6c6   :  { %1891 = vsyncpa [#allocation4], 1 }
 0x6c7   :  { %1892 = vsyncpa [#allocation7], 1 }
 0x6c8   :  { %1893 = vsyncpa [#allocation5], 1 }

</bundles_post_ra>
